<compile_context>
chip_gen: v6e
topology: v6e:2x2x1
jax: 0.10.0
libtpu: 0.0.40
codegen_flags: <defaults>
</compile_context>

<pallas_src>
import functools

import numpy as np
import jax
import jax.numpy as jnp
from jax import lax
from jax.experimental import pallas as pl
from jax.experimental.pallas import tpu as pltpu


# ---------------------------------------------------------------------------
# Bicubic interpolation matrices (PyTorch F.interpolate semantics, host glue)
# ---------------------------------------------------------------------------
def _cubic_coeffs(t, A=-0.75):
    def cc1(x):  # |x| <= 1
        return ((A + 2.0) * x - (A + 3.0)) * x * x + 1.0

    def cc2(x):  # 1 < |x| < 2
        return ((A * x - 5.0 * A) * x + 8.0 * A) * x - 4.0 * A

    return np.array([cc2(t + 1.0), cc1(t), cc1(1.0 - t), cc2(2.0 - t)],
                    dtype=np.float64)


def bicubic_1d_matrix(in_size, out_size):
    """M[out, in] s.t. out = M @ in reproduces torch bicubic, align_corners=False."""
    M = np.zeros((out_size, in_size), dtype=np.float64)
    if in_size == out_size:
        np.fill_diagonal(M, 1.0)
        return M
    scale = in_size / out_size
    for o in range(out_size):
        real = (o + 0.5) * scale - 0.5
        idx = int(np.floor(real))
        t = real - idx
        coeffs = _cubic_coeffs(t)
        for k in range(4):
            src = min(max(idx - 1 + k, 0), in_size - 1)
            M[o, src] += coeffs[k]
    return M


# ---------------------------------------------------------------------------
# Host-side composite linear operator W  (out = W @ gathered_codebook_rows)
# ---------------------------------------------------------------------------
def _build_composite_w(scales, pred):
    """W (L_out, L), float64: residual adds + bicubic chains + pred substitution."""
    N = len(scales)
    assert N >= 2, scales
    L = sum(s * s for s in scales)
    offs = np.cumsum([0] + [s * s for s in scales])
    sel = []                                   # S_i: (s_i^2, L) level selectors
    for i, s in enumerate(scales):
        m = np.zeros((s * s, L), dtype=np.float64)
        m[np.arange(s * s), offs[i] + np.arange(s * s)] = 1.0
        sel.append(m)

    curr = sel[0]                              # curr_scales[0] operator
    blocks, currs = [], [curr]
    for i in range(N - 1):
        m1 = bicubic_1d_matrix(scales[i], scales[i + 1])
        K = np.kron(m1, m1)                    # (s_{i+1}^2, s_i^2)
        up = K @ curr                          # feature_without_first_level[i]
        blocks.append(up)
        curr = up + sel[i + 1]                 # curr_scales[i+1]
        currs.append(curr)

    if pred is not None and pred is not False:
        assert 0 <= pred <= N - 2, pred
        blocks[pred] = currs[pred + 1]
    return np.concatenate(blocks, axis=0)      # (L_out, L)


def _ceil_to(x, m):
    return (x + m - 1) // m * m


# ---------------------------------------------------------------------------
# Fused Pallas kernel: one-hot gather matmul + composite-W matmul + packed store
# ---------------------------------------------------------------------------
def _make_vq_tower_kernel(B, BV, L_pad):
    def kernel(inds_ref, cb_ref, w_ref, out_ref):
        # inds_ref : (L_pad, B)  int32, already shifted by b*V (pad rows = -1)
        # cb_ref   : (B*V, B*D)  f32 block-diagonal codebook
        # w_ref    : (2, L_out_pad//2, L_pad) f32, even/odd rows of composite W
        # out_ref  : (L_out_pad//2, 2*B*D) f32, tokens packed two per row

        # One-hot over all tokens and all batches at once: exactly B disjoint
        # hits per row (one per batch block of the block-diag codebook).
        lane = lax.broadcasted_iota(jnp.int32, (L_pad, BV), 1)
        hit = lane == inds_ref[:, 0:1]
        for b in range(1, B):
            hit = jnp.logical_or(hit, lane == inds_ref[:, b:b + 1])
        onehot = hit.astype(jnp.float32)                       # (L_pad, B*V)

        # HIGHEST so the one-hot matmul reproduces codebook rows exactly
        # (table-lookup semantics); single matmul, B*V-deep contraction.
        feats = jnp.dot(onehot, cb_ref[...],
                        preferred_element_type=jnp.float32,
                        precision=lax.Precision.HIGHEST)       # (L_pad, B*D)

        # Composite operator: two row-split matmuls so the result can be stored
        # as one lane-dense (rows, 2*B*D) block.  HIGHEST also here so the
        # folded pred_for_curr_shape block keeps its residual-summed codebook
        # rows exact; at this size the extra passes are noise.
        y_even = jnp.dot(w_ref[0], feats,
                         preferred_element_type=jnp.float32,
                         precision=lax.Precision.HIGHEST)      # (rows, B*D)
        y_odd = jnp.dot(w_ref[1], feats,
                        preferred_element_type=jnp.float32,
                        precision=lax.Precision.HIGHEST)       # (rows, B*D)

        # Single contiguous, sublane-aligned, lane-dense store.
        out_ref[...] = jnp.concatenate([y_even, y_odd], axis=-1)

    return kernel


# ---------------------------------------------------------------------------
# VQTower.forward
# ---------------------------------------------------------------------------
@functools.partial(jax.jit, static_argnums=(2, 3))
def vq_tower_forward(vision_inds, codebook, scale_rq_layers,
                     pred_for_curr_shape=None):
    """TokenFlow VQTower.forward.  vision_inds: (B, num_patches) int, codebook: (V, D)."""
    scale_rq_layers = tuple(int(s) for s in scale_rq_layers)
    assert vision_inds.ndim == 2
    B, L = vision_inds.shape
    V, D = codebook.shape
    num_patches = sum(s * s for s in scale_rq_layers)
    assert L == num_patches, (vision_inds.shape, num_patches)
    L_out = sum(s * s for s in scale_rq_layers[1:])

    L_pad = _ceil_to(L, 8)            # one-hot / contraction rows, sublane aligned
    L_out_pad = _ceil_to(L_out, 16)   # output rows; /2 stays sublane aligned

    # Host (trace-time) constant: composite operator, padded and split even/odd.
    W = _build_composite_w(scale_rq_layers, pred_for_curr_shape)     # (L_out, L) f64
    W_pad = np.zeros((L_out_pad, L_pad), dtype=np.float32)
    W_pad[:L_out, :L] = W.astype(np.float32)
    w_eo = jnp.asarray(np.stack([W_pad[0::2], W_pad[1::2]]))         # (2, L_out_pad//2, L_pad)

    # Token indices, pre-shifted by b*V, tokens on sublanes: (L_pad, B) int32.
    shift = (jnp.arange(B, dtype=jnp.int32) * V)[:, None]
    inds_lt = jnp.transpose(vision_inds.astype(jnp.int32) + shift)   # (L, B)
    inds_lt = jnp.pad(inds_lt, ((0, L_pad - L), (0, 0)), constant_values=-1)

    # Block-diagonal codebook (B*V, B*D): one 128-deep gather matmul for all batches.
    cb32 = codebook.astype(jnp.float32)
    cb_bd = jax.scipy.linalg.block_diag(*([cb32] * B))               # (B*V, B*D)

    kernel = _make_vq_tower_kernel(B, B * V, L_pad)
    out_packed = pl.pallas_call(
        kernel,
        out_shape=jax.ShapeDtypeStruct((L_out_pad // 2, 2 * B * D), jnp.float32),
        in_specs=[pl.BlockSpec(memory_space=pltpu.MemorySpace.VMEM)] * 3,
        out_specs=pl.BlockSpec(memory_space=pltpu.MemorySpace.VMEM),
    )(inds_lt, cb_bd, w_eo)

    # Un-pack: (L_out_pad/2, 2*B*D) -> (L_out_pad, B, D) -> (B, L_out, D).
    out = out_packed.reshape(L_out_pad, B, D)[:L_out]
    return jnp.transpose(out, (1, 0, 2))


# ---------------------------------------------------------------------------
# Pure numpy reference (per-level chain, no Pallas) for the correctness check
# ---------------------------------------------------------------------------
def vq_tower_forward_ref(vision_inds, codebook, scale_rq_layers,
                         pred_for_curr_shape=None):
    inds = np.asarray(vision_inds)
    cb = np.asarray(codebook).astype(np.float64)
    B, L = inds.shape
    D = cb.shape[1]
    feats = cb[inds.reshape(-1)].reshape(B, L, D)
    fwfl, cs = [], []
    cur = 0
    f_hat = np.zeros((B, scale_rq_layers[0] ** 2, D))
    for i in range(len(scale_rq_layers) - 1):
        s, ns = scale_rq_layers[i], scale_rq_layers[i + 1]
        f_hat = f_hat + feats[:, cur:cur + s * s]
        cs.append(f_hat)
        M = bicubic_1d_matrix(s, ns)
        K = np.kron(M, M)
        f_hat = np.einsum('os,bsd->bod', K, f_hat)
        fwfl.append(f_hat)
        cur += s * s
    f_hat = f_hat + feats[:, cur:]
    cs.append(f_hat)
    if pred_for_curr_shape is not None and pred_for_curr_shape is not False:
        fwfl[pred_for_curr_shape] = cs[pred_for_curr_shape + 1]
    return np.concatenate(fwfl, axis=1).astype(np.float32)


if __name__ == "__main__":
    key = jax.random.PRNGKey(0)
    B = 2                         # batch
    D = 32                        # vq_model.embed_dim (codebook feature dim)
    V = 64                        # vq_model.n_embed  (codebook size)
    scale_rq_layers = (1, 2, 4, 8)
    L = sum(s * s for s in scale_rq_layers)            # num_patches = 85

    k_cb, k_idx = jax.random.split(key)
    codebook = jax.random.normal(k_cb, (V, D), dtype=jnp.float32)
    vision_inds = jax.random.randint(k_idx, (B, L), 0, V, dtype=jnp.int32)

    expected_tokens = sum(s * s for s in scale_rq_layers[1:])   # 84

    out = vq_tower_forward(vision_inds, codebook, scale_rq_layers, None)
    out = jax.block_until_ready(out)
    assert out.shape == (B, expected_tokens, D), out.shape
    ref = vq_tower_forward_ref(vision_inds, codebook, scale_rq_layers, None)
    np.testing.assert_allclose(np.asarray(out), ref, rtol=2e-3, atol=2e-3)

    # pred_for_curr_shape path (static Python int, as in the reference module).
    out_p = vq_tower_forward(vision_inds, codebook, scale_rq_layers, 1)
    out_p = jax.block_until_ready(out_p)
    assert out_p.shape == (B, expected_tokens, D), out_p.shape
    ref_p = vq_tower_forward_ref(vision_inds, codebook, scale_rq_layers, 1)
    np.testing.assert_allclose(np.asarray(out_p), ref_p, rtol=2e-3, atol=2e-3)

    print("KERNEL_OK")
</pallas_src>

<mosaic_0001>
module attributes {stable_mosaic.version = 11 : i64} {
  func.func @kernel(%arg0: memref<88x2xi32, #tpu.memory_space<vmem>>, %arg1: memref<128x64xf32, #tpu.memory_space<vmem>>, %arg2: memref<2x48x88xf32, #tpu.memory_space<vmem>>, %arg3: memref<48x128xf32, #tpu.memory_space<vmem>>) attributes {dimension_semantics = [], scalar_prefetch = 0 : i64, scratch_operands = 0 : i64, tpu.core_type = #tpu.core_type<tc>} {
    %0 = tpu.iota {dimensions = array<i32: 1>} : vector<88x128xi32>
    %c0 = arith.constant 0 : index
    %c0_0 = arith.constant 0 : index
    %1 = vector.load %arg0[%c0, %c0_0] : memref<88x2xi32, #tpu.memory_space<vmem>>, vector<88x1xi32>
    %2 = vector.broadcast %1 : vector<88x1xi32> to vector<88x128xi32>
    %3 = arith.cmpi eq, %0, %2 : vector<88x128xi32>
    %c0_1 = arith.constant 0 : index
    %c1 = arith.constant 1 : index
    %4 = vector.load %arg0[%c0_1, %c1] : memref<88x2xi32, #tpu.memory_space<vmem>>, vector<88x1xi32>
    %5 = vector.broadcast %4 : vector<88x1xi32> to vector<88x128xi32>
    %6 = arith.cmpi eq, %0, %5 : vector<88x128xi32>
    %7 = arith.ori %3, %6 : vector<88x128xi1>
    %8 = arith.extui %7 : vector<88x128xi1> to vector<88x128xi32>
    %9 = arith.sitofp %8 : vector<88x128xi32> to vector<88x128xf32>
    %c0_2 = arith.constant 0 : index
    %c0_3 = arith.constant 0 : index
    %10 = vector.load %arg1[%c0_2, %c0_3] : memref<128x64xf32, #tpu.memory_space<vmem>>, vector<128x64xf32>
    %cst = arith.constant dense<0.000000e+00> : vector<88x64xf32>
    %11 = tpu.matmul %9, %10, %cst {dimension_numbers = #tpu.dot_dimension_numbers<[1], [0], [0], [1], [0, 0, 1, 1], [], []>, precision = #tpu.contract_precision<fp32>} : vector<88x128xf32>, vector<128x64xf32>, vector<88x64xf32> -> vector<88x64xf32>
    %c0_4 = arith.constant 0 : index
    %c0_5 = arith.constant 0 : index
    %c0_6 = arith.constant 0 : index
    %12 = vector.load %arg2[%c0_4, %c0_5, %c0_6] : memref<2x48x88xf32, #tpu.memory_space<vmem>>, vector<1x48x88xf32>
    %13 = vector.shape_cast %12 : vector<1x48x88xf32> to vector<48x88xf32>
    %cst_7 = arith.constant dense<0.000000e+00> : vector<48x64xf32>
    %14 = tpu.matmul %13, %11, %cst_7 {dimension_numbers = #tpu.dot_dimension_numbers<[1], [0], [0], [1], [0, 0, 1, 1], [], []>, precision = #tpu.contract_precision<fp32>} : vector<48x88xf32>, vector<88x64xf32>, vector<48x64xf32> -> vector<48x64xf32>
    %c1_8 = arith.constant 1 : index
    %c0_9 = arith.constant 0 : index
    %c0_10 = arith.constant 0 : index
    %15 = vector.load %arg2[%c1_8, %c0_9, %c0_10] : memref<2x48x88xf32, #tpu.memory_space<vmem>>, vector<1x48x88xf32>
    %16 = vector.shape_cast %15 : vector<1x48x88xf32> to vector<48x88xf32>
    %cst_11 = arith.constant dense<0.000000e+00> : vector<48x64xf32>
    %17 = tpu.matmul %16, %11, %cst_11 {dimension_numbers = #tpu.dot_dimension_numbers<[1], [0], [0], [1], [0, 0, 1, 1], [], []>, precision = #tpu.contract_precision<fp32>} : vector<48x88xf32>, vector<88x64xf32>, vector<48x64xf32> -> vector<48x64xf32>
    %18 = tpu.concatenate %14, %17 in 1 : vector<48x64xf32>, vector<48x64xf32> -> vector<48x128xf32>
    %c0_12 = arith.constant 0 : index
    %c0_13 = arith.constant 0 : index
    %19 = vector.load %arg3[%c0_12, %c0_13] : memref<48x128xf32, #tpu.memory_space<vmem>>, vector<48x128xf32>
    tpu.vector_store %arg3[%c0_12, %c0_13], %18 {strides = array<i32>} : memref<48x128xf32, #tpu.memory_space<vmem>>, vector<48x128xf32>,
    return
  }
}

</mosaic_0001>

<bundles_post_ra>
// kernel: vq_tower_forward.1
= control target key start
LH: loop header
LB: loop body
LE: loop exit
PB: predicated region body
PF: predicated region fallthrough
CT: control target
= control target key end

     0   :  { %v4097_v0 = vmov 0   ;;  %v4098_v3 = vmov 0.0   ;;  %vm4099_vm0 = vmmov 0   ;;  %v4100_v9 = vmov 1   ;;  %s5705_s0 = inlined_call_operand.vmem [shape: s32[88,2], index: 0, kind: input, shape index: {}]   ;;  %s5706_s1 = inlined_call_operand.vmem [shape: f32[128,64], index: 1, kind: input, shape index: {}]   ;;  %s5707_s2 = inlined_call_operand.vmem [shape: f32[2,48,88], index: 2, kind: input, shape index: {}]   ;;  %s5708_s3 = inlined_call_operand.vmem [shape: f32[48,128], index: 3, kind: output, shape index: {}]  }
   0x1   :  { %4094 = vset.pattern.permute.xlu1 %v4097_v0  ;;  %4092 = vset.pattern.permute.xlu0 %v4097_v0  ;;  %v17_v1 = vld [vmem:[%s5705_s0 + $0x8] sm:$0xff]  ;;  %v16_v2 = vld [vmem:[%s5705_s0] sm:$0xff]  ;;  %v163_v4 = vld [vmem:[%s5706_s1 + $0x78] sm:$0xff] }
   0x2   :  { %31 = vperm.xlu1 %4094, %v17_v1   ;;  %28 = vperm.xlu0 %4092, %v16_v2   ;;  %v4134_v5 = vand.u32 4294901760, %v163_v4  ;;  %v162_v6 = vld [vmem:[%s5706_s1 + $0x70] sm:$0xff]  ;;  %v161_v7 = vld [vmem:[%s5706_s1 + $0x68] sm:$0xff]  ;;  %v160_v8 = vld [vmem:[%s5706_s1 + $0x60] sm:$0xff] }
   0x3   :  { %3389 = vmatprep.subr.mxu1 %v4098_v3  ;;  %3324 = vmatprep.subr.mxu0 %v4098_v3  ;;  %v4149_v10 = vand.u32 4294901760, %v162_v6  ;;  %v4151_v11 = vand.u32 4294901760, %v161_v7  ;;  %v4153_v12 = vand.u32 4294901760, %v160_v8  ;;  %v159_v13 = vld [vmem:[%s5706_s1 + $0x58] sm:$0xff]  ;;  %v158_v14 = vld [vmem:[%s5706_s1 + $0x50] sm:$0xff]  ;;  %v157_v15 = vld [vmem:[%s5706_s1 + $0x48] sm:$0xff] }
   0x4   :  { %3421 = vmatprep.mubr.msk.f32.mxu1 %vm4099_vm0, %v4098_v3  ;;  %3356 = vmatprep.mubr.msk.f32.mxu0 %vm4099_vm0, %v4098_v3  ;;  %v4165_v16 = vsub.f32 %v163_v4, %v4134_v5  ;;  %v4167_v17 = vand.u32 4294901760, %v159_v13  ;;  %v4169_v18 = vand.u32 4294901760, %v158_v14  ;;  %v4171_v19 = vand.u32 4294901760, %v157_v15  ;;  %v156_v20 = vld [vmem:[%s5706_s1 + $0x40] sm:$0xff]  ;;  %v18_v21 = vld [vmem:[%s5705_s0 + $0x10] sm:$0xff]  ;;  %v19_v35 = vld [vmem:[%s5705_s0 + $0x18] sm:$0xff] }
   0x5   :  { %v4180_v22 = vsub.f32 %v162_v6, %v4149_v10  ;;  %v4183_v23 = vsub.f32 %v161_v7, %v4151_v11  ;;  %v4186_v24 = vsub.f32 %v160_v8, %v4153_v12  ;;  %3325 = vmatpush3.msra.mxu0 %v4134_v5  ;;  %v4189_v25 = vand.u32 4294901760, %v156_v20  ;;  %v155_v39 = vld [vmem:[%s5706_s1 + $0x38] sm:$0xff]  ;;  %v154_v43 = vld [vmem:[%s5706_s1 + $0x30] sm:$0xff]  ;;  %v153_v44 = vld [vmem:[%s5706_s1 + $0x28] sm:$0xff] }
   0x6   :  { %4095 = vset.pattern.permute.xlu1 %v4100_v9  ;;  %4093 = vset.pattern.permute.xlu0 %v4100_v9  ;;  %v5727_v26 = vand.u32 4294901760, %v4165_v16  ;;  %v4193_v27 = vsub.f32 %v159_v13, %v4167_v17  ;;  %v4197_v28 = vsub.f32 %v158_v14, %v4169_v18  ;;  %v4204_v32 = vsub.f32 %v157_v15, %v4171_v19  ;;  %v152_v47 = vld [vmem:[%s5706_s1 + $0x20] sm:$0xff]  ;;  %v151_v55 = vld [vmem:[%s5706_s1 + $0x18] sm:$0xff]  ;;  %v150_v62 = vld [vmem:[%s5706_s1 + $0x10] sm:$0xff] }
   0x7   :  { %75 = vperm.xlu1 %4095, %v17_v1   ;;  %72 = vperm.xlu0 %4093, %v16_v2   ;;  %v5723_v29 = vand.u32 4294901760, %v4180_v22  ;;  %v5722_v30 = vand.u32 4294901760, %v4183_v23  ;;  %v5721_v31 = vand.u32 4294901760, %v4186_v24  ;;  %v4221_v38 = vsub.f32 %v156_v20, %v4189_v25  ;;  %v20_v51 = vld [vmem:[%s5705_s0 + $0x20] sm:$0xff]  ;;  %v21_v4 = vld [vmem:[%s5705_s0 + $0x28] sm:$0xff] }
   0x8   :  { %3326 = vmatprep.subr.mxu0 %v4098_v3  ;;  %v359_v33 = vsub.f32 %v4165_v16, %v5727_v26  ;;  %v5720_v34 = vand.u32 4294901760, %v4193_v27  ;;  %v5719_v42 = vand.u32 4294901760, %v4197_v28  ;;  %v5718_v46 = vand.u32 4294901760, %v4204_v32  ;;  %v149_v7 = vld [vmem:[%s5706_s1 + $0x8] sm:$0xff] }
   0x9   :  { %3327 = vmatpush3.msra.mxu0 %v4149_v10  ;;  %v366_v36 = vsub.f32 %v4180_v22, %v5723_v29  ;;  %v373_v37 = vsub.f32 %v4183_v23, %v5722_v30  ;;  %v380_v41 = vsub.f32 %v4186_v24, %v5721_v31  ;;  %v4245_v50 = vand.u32 4294901760, %v155_v39 }
   0xa   :  { %3328 = vmatprep.subr.mxu0 %v4098_v3  ;;  %v360_v40 = vand.u32 4294901760, %v359_v33  ;;  %v387_v49 = vsub.f32 %v4193_v27, %v5720_v34  ;;  %v5717_v52 = vand.u32 4294901760, %v4221_v38  ;;  %v4252_v53 = vand.u32 4294901760, %v154_v43 }
   0xb   :  { %4096 = vset.pattern.permute.xlu1 %v4097_v0  ;;  %78 = vperm.xlu0 %4093, %v18_v21   ;;  %v367_v45 = vand.u32 4294901760, %v366_v36  ;;  %v374_v48 = vand.u32 4294901760, %v373_v37  ;;  %v4254_v54 = vand.u32 4294901760, %v153_v44  ;;  %v381_v56 = vand.u32 4294901760, %v380_v41  ;;  %v148_v36 = vld [vmem:[%s5706_s1] sm:$0xff]  ;;  %v22_v37 = vld [vmem:[%s5705_s0 + $0x30] sm:$0xff] }
   0xc   :  { %34 = vperm.xlu1 %4096, %v18_v21   ;;  %3329 = vmatpush3.msra.mxu0 %v4151_v11  ;;  %v394_v57 = vsub.f32 %v4197_v28, %v5719_v42  ;;  %v4264_v58 = vsub.f32 %v155_v39, %v4245_v50  ;;  %v4266_v59 = vand.u32 4294901760, %v152_v47  ;;  %v401_v60 = vsub.f32 %v4204_v32, %v5718_v46 }
   0xd   :  { %3330 = vmatprep.subr.mxu0 %v4098_v3  ;;  %3390 = vmatpush3.msra.mxu1 %v360_v40  ;;  %v4274_v61 = vsub.f32 %v154_v43, %v4252_v53  ;;  %v388_v63 = vand.u32 4294901760, %v387_v49  ;;  %v4281_v1 = vsub.f32 %v153_v44, %v4254_v54  ;;  %v4283_v2 = vand.u32 4294901760, %v151_v55 }
   0xe   :  { %3391 = vmatprep.subr.mxu1 %v4098_v3  ;;  %3331 = vmatpush3.msra.mxu0 %v4153_v12  ;;  %v5716_v0 = vand.u32 4294901760, %v4264_v58  ;;  %v408_v6 = vsub.f32 %v4221_v38, %v5717_v52  ;;  %v395_v8 = vand.u32 4294901760, %v394_v57  ;;  %v4298_v13 = vsub.f32 %v152_v47, %v4266_v59 }
   0xf   :  { %81 = vperm.xlu0 %4093, %v19_v35   ;;  %3392 = vmatpush3.msra.mxu1 %v367_v45  ;;  %v5715_v9 = vand.u32 4294901760, %v4274_v61  ;;  %v4300_v14 = vand.u32 4294901760, %v150_v62  ;;  %v402_v15 = vand.u32 4294901760, %v401_v60  ;;  %v5714_v21 = vand.u32 4294901760, %v4281_v1 }
  0x10   :  { %37 = vperm.xlu1 %4096, %v19_v35   ;;  %3393 = vmatprep.subr.mxu1 %v4098_v3  ;;  %v415_v20 = vsub.f32 %v4264_v58, %v5716_v0  ;;  %v4309_v33 = vsub.f32 %v151_v55, %v4283_v2  ;;  %v4311_v35 = vand.u32 4294901760, %v149_v7  ;;  %v409_v39 = vand.u32 4294901760, %v408_v6  ;;  %v24_v6 = vld [vmem:[%s5705_s0 + $0x40] sm:$0xff] }
  0x11   :  { %3332 = vmatprep.subr.mxu0 %v4098_v3  ;;  %3394 = vmatpush3.msra.mxu1 %v374_v48  ;;  %v422_v40 = vsub.f32 %v4274_v61, %v5715_v9  ;;  %v5713_v41 = vand.u32 4294901760, %v4298_v13  ;;  %v4326_v43 = vsub.f32 %v150_v62, %v4300_v14  ;;  %v4330_v44 = vand.u32 4294901760, %v148_v36 }
  0x12   :  { %3395 = vmatprep.subr.mxu1 %v4098_v3  ;;  %3333 = vmatpush3.msra.mxu0 %v4167_v17  ;;  %v416_v45 = vand.u32 4294901760, %v415_v20  ;;  %v429_v47 = vsub.f32 %v4281_v1, %v5714_v21  ;;  %v5712_v48 = vand.u32 4294901760, %v4309_v33  ;;  %v4337_v49 = vsub.f32 %v149_v7, %v4311_v35 }
  0x13   :  { %84 = vperm.xlu0 %4093, %v20_v51   ;;  %3396 = vmatpush3.msra.mxu1 %v381_v56  ;;  %v423_v55 = vand.u32 4294901760, %v422_v40  ;;  %v436_v56 = vsub.f32 %v4298_v13, %v5713_v41  ;;  %v5711_v57 = vand.u32 4294901760, %v4326_v43  ;;  %v4351_v60 = vsub.f32 %v148_v36, %v4330_v44 }
  0x14   :  { %40 = vperm.xlu1 %4096, %v20_v51   ;;  %3397 = vmatprep.subr.mxu1 %v4098_v3  ;;  %v23_v51 = vld [vmem:[%s5705_s0 + $0x38] sm:$0xff]  ;;  %v430_v62 = vand.u32 4294901760, %v429_v47  ;;  %v26_v47 = vld [vmem:[%s5705_s0 + $0x50] sm:$0xff] }
  0x15   :  { %3334 = vmatprep.subr.mxu0 %v4098_v3  ;;  %3398 = vmatpush3.msra.mxu1 %v388_v63  ;;  %v443_v63 = vsub.f32 %v4309_v33, %v5712_v48  ;;  %v437_v7 = vand.u32 4294901760, %v436_v56 }
  0x16   :  { %3399 = vmatprep.subr.mxu1 %v4098_v3  ;;  %3335 = vmatpush3.msra.mxu0 %v4169_v18 }
  0x17   :  { %87 = vperm.xlu0 %4093, %v21_v4   ;;  %3400 = vmatpush3.msra.mxu1 %v395_v8  ;;  %v450_v8 = vsub.f32 %v4326_v43, %v5711_v57  ;;  %v444_v20 = vand.u32 4294901760, %v443_v63 }
  0x18   :  { %43 = vperm.xlu1 %4096, %v21_v4   ;;  %3401 = vmatprep.subr.mxu1 %v4098_v3  ;;  %v5710_v4 = vand.u32 4294901760, %v4337_v49 }
  0x19   :  { %3336 = vmatprep.subr.mxu0 %v4098_v3  ;;  %3402 = vmatpush3.msra.mxu1 %v402_v15  ;;  %v5709_v15 = vand.u32 4294901760, %v4351_v60 }
  0x1a   :  { %3403 = vmatprep.subr.mxu1 %v4098_v3  ;;  %3337 = vmatpush3.msra.mxu0 %v4171_v19  ;;  %v457_v36 = vsub.f32 %v4337_v49, %v5710_v4 }
  0x1b   :  { %90 = vperm.xlu0 %4093, %v22_v37   ;;  %3404 = vmatpush3.msra.mxu1 %v409_v39  ;;  %v451_v39 = vand.u32 4294901760, %v450_v8  ;;  %v464_v40 = vsub.f32 %v4351_v60, %v5709_v15 }
  0x1c   :  { %46 = vperm.xlu1 %4096, %v22_v37   ;;  %3405 = vmatprep.subr.mxu1 %v4098_v3  ;;  %v25_v37 = vld [vmem:[%s5705_s0 + $0x48] sm:$0xff] }
  0x1d   :  { %3338 = vmatprep.subr.mxu0 %v4098_v3  ;;  %3406 = vmatpush3.msra.mxu1 %v416_v45  ;;  %v458_v45 = vand.u32 4294901760, %v457_v36 }
  0x1e   :  { %3407 = vmatprep.subr.mxu1 %v4098_v3  ;;  %3339 = vmatpush3.msra.mxu0 %v4189_v25 }
  0x1f   :  { %93 = vperm.xlu0 %4093, %v23_v51   ;;  %3408 = vmatpush3.msra.mxu1 %v423_v55  ;;  %v14_v55 = vlaneseq }
  0x20   :  { %49 = vperm.xlu1 %4096, %v23_v51   ;;  %3409 = vmatprep.subr.mxu1 %v4098_v3  ;;  %v465_v51 = vand.u32 4294901760, %v464_v40  ;;  %v4101_v40 = vmov 1.0  }
  0x21   :  { %3340 = vmatprep.subr.mxu0 %v4098_v3  ;;  %3410 = vmatpush3.msra.mxu1 %v430_v62  ;;  %v4402_v63 = vand.u32 127, %v14_v55 }
  0x22   :  { %3411 = vmatprep.subr.mxu1 %v4098_v3  ;;  %3341 = vmatpush3.msra.mxu0 %v4245_v50 }
  0x23   :  { %96 = vperm.xlu0 %4093, %v24_v6   ;;  %3412 = vmatpush3.msra.mxu1 %v437_v7 }
  0x24   :  { %52 = vperm.xlu1 %4096, %v24_v6   ;;  %3413 = vmatprep.subr.mxu1 %v4098_v3 }
  0x25   :  { %3342 = vmatprep.subr.mxu0 %v4098_v3  ;;  %3414 = vmatpush3.msra.mxu1 %v444_v20 }
  0x26   :  { %3415 = vmatprep.subr.mxu1 %v4098_v3  ;;  %3343 = vmatpush3.msra.mxu0 %v4252_v53 }
  0x27   :  { %99 = vperm.xlu0 %4093, %v25_v37   ;;  %3416 = vmatpush3.msra.mxu1 %v451_v39 }
  0x28   :  { %55 = vperm.xlu1 %4096, %v25_v37   ;;  %3417 = vmatprep.subr.mxu1 %v4098_v3 }
  0x29   :  { %3344 = vmatprep.subr.mxu0 %v4098_v3  ;;  %3418 = vmatpush3.msra.mxu1 %v458_v45 }
  0x2a   :  { %3345 = vmatpush3.msra.mxu0 %v4254_v54  ;;  %3419 = vmatprep.subr.mxu1 %v4098_v3 }
  0x2b   :  { %102 = vperm.xlu0 %4093, %v26_v47   ;;  %3346 = vmatprep.subr.mxu0 %v4098_v3 }
  0x2c   :  { %58 = vperm.xlu1 %4096, %v26_v47   ;;  %3420 = vmatpush3.msra.mxu1 %v465_v51 }
  0x2d   :  { %3347 = vmatpush3.msra.mxu0 %v4266_v59  ;;  %3519 = vmatprep.subr.mxu1 %v4098_v3 }
  0x2e   :  { %3348 = vmatprep.subr.mxu0 %v4098_v3 }
  0x2f   :  { %3349 = vmatpush3.msra.mxu0 %v4283_v2 }
  0x30   :  { %3350 = vmatprep.subr.mxu0 %v4098_v3 }
  0x31   :  { %3351 = vmatpush3.msra.mxu0 %v4300_v14 }
  0x32   :  { %3352 = vmatprep.subr.mxu0 %v4098_v3 }
  0x33   :  { %3353 = vmatpush3.msra.mxu0 %v4311_v35 }
  0x34   :  { %3354 = vmatprep.subr.mxu0 %v4098_v3 }
  0x35   :  { %3355 = vmatpush3.msra.mxu0 %v4330_v44 }
  0x36   :  { %3454 = vmatprep.subr.mxu0 %v4098_v3 }
  0x7d   :  { %v29_v56 = vpop.permute.xlu0 %28  ;;  %v32_v62 = vpop.permute.xlu1 %31 }
  0x7e   :  { %vm61_vm1 = vcmp.eq.s32.totalorder %v4402_v63, %v32_v62  ;;  %vm60_vm4 = vcmp.eq.s32.totalorder %v4402_v63, %v29_v56 }
  0x82   :  { %v76_v6 = vpop.permute.xlu1 %75  ;;  %v73_v7 = vpop.permute.xlu0 %72 }
  0x83   :  { %vm105_vm2 = vcmp.eq.s32.totalorder %v4402_v63, %v76_v6  ;;  %vm104_vm3 = vcmp.eq.s32.totalorder %v4402_v63, %v73_v7 }
  0x84   :  { %vm4408_vm5 = vmor %vm61_vm1, %vm105_vm2 }
  0x85   :  { %v2909_v20 = vsel %vm4408_vm5, 1.0, %v4098_v3  ;;  %vm4415_vm6 = vmor %vm60_vm4, %vm104_vm3 }
  0x86   :  { %v4419_v37 = vsub.f32 %v2909_v20, %v2909_v20  ;;  %v2908_v39 = vsel %vm4415_vm6, 1.0, %v4098_v3  ;;  %3422 = vmatmul.mubr.msk.f32.vlgmr.msra.gmra.mxu1 %vm4415_vm6, %v4101_v40  ;;  %v79_v45 = vpop.permute.xlu0 %78 }
  0x87   :  { %v4427_v47 = vsub.f32 %v2908_v39, %v2908_v39  ;;  %vm106_vm7 = vcmp.eq.s32.totalorder %v4402_v63, %v79_v45  ;;  %v35_v51 = vpop.permute.xlu1 %34  ;;  %3424 = vmatprep.mubr.msk.f32.mxu1 %vm4099_vm0, %v4098_v3  ;;  %3520 = vmatpush3.msra.mxu1 %v4134_v5 }
  0x88   :  { %vm62_vm8 = vcmp.eq.s32.totalorder %v4402_v63, %v35_v51  ;;  %3521 = vmatprep.subr.mxu1 %v4098_v3  ;;  %v257_v62 = vand.u32 4294901760, %v4419_v37 }
  0x89   :  { %vm4435_vm9 = vmor %vm62_vm8, %vm106_vm7  ;;  %v247_v56 = vand.u32 4294901760, %v4427_v47  ;;  %3522 = vmatpush3.msra.mxu1 %v4149_v10 }
  0x8a   :  { %v2910_v6 = vsel %vm4435_vm9, 1.0, %v4098_v3  ;;  %3425 = vmatmul.mubr.msk.f32.gmra.mxu1 %vm4408_vm5, %v4101_v40  ;;  %v82_v7 = vpop.permute.xlu0 %81  ;;  %3523 = vmatprep.subr.mxu1 %v4098_v3 }
  0x8b   :  { %v4449_v20 = vsub.f32 %v2910_v6, %v2910_v6  ;;  %vm107_vm10 = vcmp.eq.s32.totalorder %v4402_v63, %v82_v7  ;;  %v38_v39 = vpop.permute.xlu1 %37  ;;  %3427 = vmatprep.mubr.msk.f32.mxu1 %vm4099_vm0, %v4098_v3  ;;  %v248_v45 = vsub.f32 %v4427_v47, %v247_v56  ;;  %3524 = vmatpush3.msra.mxu1 %v4151_v11 }
  0x8c   :  { %vm63_vm11 = vcmp.eq.s32.totalorder %v4402_v63, %v38_v39  ;;  %3525 = vmatprep.subr.mxu1 %v4098_v3  ;;  %v258_v7 = vsub.f32 %v4419_v37, %v257_v62 }
  0x8d   :  { %vm4460_vm12 = vmor %vm63_vm11, %vm107_vm10  ;;  %v249_v6 = vand.u32 4294901760, %v248_v45  ;;  %v267_v15 = vand.u32 4294901760, %v4449_v20  ;;  %3526 = vmatpush3.msra.mxu1 %v4153_v12 }
  0x8e   :  { %v2911_v4 = vsel %vm4460_vm12, 1.0, %v4098_v3  ;;  %3428 = vmatmul.mubr.msk.f32.gmra.mxu1 %vm4435_vm9, %v4101_v40  ;;  %v85_v39 = vpop.permute.xlu0 %84  ;;  %3527 = vmatprep.subr.mxu1 %v4098_v3 }
  0x8f   :  { %v4476_v45 = vsub.f32 %v2911_v4, %v2911_v4  ;;  %3357 = vmatmul.mubr.f32.vlgmr.msra.gmra.mxu0 %v249_v6  ;;  %vm108_vm13 = vcmp.eq.s32.totalorder %v4402_v63, %v85_v39  ;;  %v41_v57 = vpop.permute.xlu1 %40  ;;  %3430 = vmatprep.mubr.msk.f32.mxu1 %vm4099_vm0, %v4098_v3  ;;  %v259_v4 = vand.u32 4294901760, %v258_v7  ;;  %v268_v6 = vsub.f32 %v4449_v20, %v267_v15 }
  0x90   :  { %vm64_vm14 = vcmp.eq.s32.totalorder %v4402_v63, %v41_v57  ;;  %3359 = vmatprep.mubr.msk.f32.mxu0 %vm4099_vm0, %v4098_v3  ;;  %3528 = vmatpush3.msra.mxu1 %v4167_v17 }
  0x91   :  { %vm4485_vm15 = vmor %vm64_vm14, %vm108_vm13  ;;  %v5728_v39 = vand.u32 4294901760, %v4476_v45  ;;  %3455 = vmatpush3.msra.mxu0 %v4165_v16  ;;  %3529 = vmatprep.subr.mxu1 %v4098_v3 }
  0x92   :  { %v2912_v57 = vsel %vm4485_vm15, 1.0, %v4098_v3  ;;  %3431 = vmatmul.mubr.msk.f32.gmra.mxu1 %vm4460_vm12, %v4101_v40  ;;  %v88_v41 = vpop.permute.xlu0 %87  ;;  %3456 = vmatprep.subr.mxu0 %v4098_v3 }
  0x93   :  { %v4502_v7 = vsub.f32 %v2912_v57, %v2912_v57  ;;  %3360 = vmatmul.mubr.f32.gmra.mxu0 %v259_v4  ;;  %vm109_vm1 = vcmp.eq.s32.totalorder %v4402_v63, %v88_v41  ;;  %v44_v21 = vpop.permute.xlu1 %43  ;;  %3433 = vmatprep.mubr.msk.f32.mxu1 %vm4099_vm0, %v4098_v3  ;;  %v269_v57 = vand.u32 4294901760, %v268_v6  ;;  %v278_v41 = vsub.f32 %v4476_v45, %v5728_v39 }
  0x94   :  { %vm65_vm2 = vcmp.eq.s32.totalorder %v4402_v63, %v44_v21  ;;  %3362 = vmatprep.mubr.msk.f32.mxu0 %vm4099_vm0, %v4098_v3  ;;  %3530 = vmatpush3.msra.mxu1 %v4169_v18 }
  0x95   :  { %vm4511_vm3 = vmor %vm65_vm2, %vm109_vm1  ;;  %3457 = vmatpush3.msra.mxu0 %v4180_v22  ;;  %3531 = vmatprep.subr.mxu1 %v4098_v3  ;;  %v5725_v21 = vand.u32 4294901760, %v4502_v7 }
  0x96   :  { %v2913_v4 = vsel %vm4511_vm3, 1.0, %v4098_v3  ;;  %3434 = vmatmul.mubr.msk.f32.gmra.mxu1 %vm4485_vm15, %v4101_v40  ;;  %v91_v0 = vpop.permute.xlu0 %90  ;;  %3458 = vmatprep.subr.mxu0 %v4098_v3 }
  0x97   :  { %v4528_v6 = vsub.f32 %v2913_v4, %v2913_v4  ;;  %3363 = vmatmul.mubr.f32.gmra.mxu0 %v269_v57  ;;  %vm110_vm4 = vcmp.eq.s32.totalorder %v4402_v63, %v91_v0  ;;  %v47_v52 = vpop.permute.xlu1 %46  ;;  %3436 = vmatprep.mubr.msk.f32.mxu1 %vm4099_vm0, %v4098_v3  ;;  %v279_v4 = vand.u32 4294901760, %v278_v41  ;;  %v288_v0 = vsub.f32 %v4502_v7, %v5725_v21 }
  0x98   :  { %vm66_vm7 = vcmp.eq.s32.totalorder %v4402_v63, %v47_v52  ;;  %3365 = vmatprep.mubr.msk.f32.mxu0 %vm4099_vm0, %v4098_v3  ;;  %3532 = vmatpush3.msra.mxu1 %v4171_v19 }
  0x99   :  { %vm4537_vm8 = vmor %vm66_vm7, %vm110_vm4  ;;  %3459 = vmatpush3.msra.mxu0 %v4183_v23  ;;  %3533 = vmatprep.subr.mxu1 %v4098_v3  ;;  %v5724_v52 = vand.u32 4294901760, %v4528_v6 }
  0x9a   :  { %v2914_v57 = vsel %vm4537_vm8, 1.0, %v4098_v3  ;;  %3437 = vmatmul.mubr.msk.f32.gmra.mxu1 %vm4511_vm3, %v4101_v40  ;;  %v94_v42 = vpop.permute.xlu0 %93  ;;  %3460 = vmatprep.subr.mxu0 %v4098_v3 }
  0x9b   :  { %v4554_v41 = vsub.f32 %v2914_v57, %v2914_v57  ;;  %3366 = vmatmul.mubr.f32.gmra.mxu0 %v279_v4  ;;  %vm111_vm10 = vcmp.eq.s32.totalorder %v4402_v63, %v94_v42  ;;  %v50_v34 = vpop.permute.xlu1 %49  ;;  %3439 = vmatprep.mubr.msk.f32.mxu1 %vm4099_vm0, %v4098_v3  ;;  %v289_v57 = vand.u32 4294901760, %v288_v0  ;;  %v298_v42 = vsub.f32 %v4528_v6, %v5724_v52 }
  0x9c   :  { %vm67_vm11 = vcmp.eq.s32.totalorder %v4402_v63, %v50_v34  ;;  %3368 = vmatprep.mubr.msk.f32.mxu0 %vm4099_vm0, %v4098_v3  ;;  %3534 = vmatpush3.msra.mxu1 %v4189_v25 }
  0x9d   :  { %vm4563_vm13 = vmor %vm67_vm11, %vm111_vm10  ;;  %3461 = vmatpush3.msra.mxu0 %v4186_v24  ;;  %3535 = vmatprep.subr.mxu1 %v4098_v3  ;;  %v5726_v34 = vand.u32 4294901760, %v4554_v41 }
  0x9e   :  { %v2915_v4 = vsel %vm4563_vm13, 1.0, %v4098_v3  ;;  %3440 = vmatmul.mubr.msk.f32.gmra.mxu1 %vm4537_vm8, %v4101_v40  ;;  %v97_v30 = vpop.permute.xlu0 %96  ;;  %3462 = vmatprep.subr.mxu0 %v4098_v3 }
  0x9f   :  { %v4580_v0 = vsub.f32 %v2915_v4, %v2915_v4  ;;  %3369 = vmatmul.mubr.f32.gmra.mxu0 %v289_v57  ;;  %vm112_vm14 = vcmp.eq.s32.totalorder %v4402_v63, %v97_v30  ;;  %v53_v29 = vpop.permute.xlu1 %52  ;;  %3442 = vmatprep.mubr.msk.f32.mxu1 %vm4099_vm0, %v4098_v3  ;;  %v299_v4 = vand.u32 4294901760, %v298_v42  ;;  %v308_v30 = vsub.f32 %v4554_v41, %v5726_v34 }
  0xa0   :  { %vm68_vm1 = vcmp.eq.s32.totalorder %v4402_v63, %v53_v29  ;;  %3371 = vmatprep.mubr.msk.f32.mxu0 %vm4099_vm0, %v4098_v3  ;;  %3536 = vmatpush3.msra.mxu1 %v4245_v50 }
  0xa1   :  { %vm4589_vm2 = vmor %vm68_vm1, %vm112_vm14  ;;  %3463 = vmatpush3.msra.mxu0 %v4193_v27  ;;  %3537 = vmatprep.subr.mxu1 %v4098_v3  ;;  %v5729_v42 = vand.u32 4294901760, %v4580_v0 }
  0xa2   :  { %v2916_v29 = vsel %vm4589_vm2, 1.0, %v4098_v3  ;;  %3443 = vmatmul.mubr.msk.f32.gmra.mxu1 %vm4563_vm13, %v4101_v40  ;;  %v100_v57 = vpop.permute.xlu0 %99  ;;  %3464 = vmatprep.subr.mxu0 %v4098_v3 }
  0xa3   :  { %3372 = vmatmul.mubr.f32.gmra.mxu0 %v299_v4  ;;  %vm113_vm4 = vcmp.eq.s32.totalorder %v4402_v63, %v100_v57  ;;  %v56_v21 = vpop.permute.xlu1 %55  ;;  %3445 = vmatprep.mubr.msk.f32.mxu1 %vm4099_vm0, %v4098_v3  ;;  %v4609_v34 = vsub.f32 %v2916_v29, %v2916_v29  ;;  %v309_v4 = vand.u32 4294901760, %v308_v30  ;;  %v318_v29 = vsub.f32 %v4580_v0, %v5729_v42 }
  0xa4   :  { %vm69_vm7 = vcmp.eq.s32.totalorder %v4402_v63, %v56_v21  ;;  %3538 = vmatpush3.msra.mxu1 %v4252_v53  ;;  %3374 = vmatprep.mubr.msk.f32.mxu0 %vm4099_vm0, %v4098_v3 }
  0xa5   :  { %vm4615_vm10 = vmor %vm69_vm7, %vm113_vm4  ;;  %3465 = vmatpush3.msra.mxu0 %v4197_v28  ;;  %3539 = vmatprep.subr.mxu1 %v4098_v3  ;;  %v5730_v39 = vand.u32 4294901760, %v4609_v34 }
  0xa6   :  { %3446 = vmatmul.mubr.msk.f32.gmra.mxu1 %vm4589_vm2, %v4101_v40  ;;  %3466 = vmatprep.subr.mxu0 %v4098_v3  ;;  %v103_v21 = vpop.permute.xlu0 %102  ;;  %v2917_v57 = vsel %vm4615_vm10, 1.0, %v4098_v3 }
  0xa7   :  { %3375 = vmatmul.mubr.f32.gmra.mxu0 %v309_v4  ;;  %3540 = vmatpush3.msra.mxu1 %v4254_v54  ;;  %vm114_vm11 = vcmp.eq.s32.totalorder %v4402_v63, %v103_v21  ;;  %v59_v30 = vpop.permute.xlu1 %58  ;;  %v4644_v4 = vsub.f32 %v2917_v57, %v2917_v57  ;;  %v328_v57 = vsub.f32 %v4609_v34, %v5730_v39 }
  0xa8   :  { %vm70_vm14 = vcmp.eq.s32.totalorder %v4402_v63, %v59_v30  ;;  %3467 = vmatpush3.msra.mxu0 %v4204_v32  ;;  %3541 = vmatprep.subr.mxu1 %v4098_v3  ;;  %v319_v63 = vand.u32 4294901760, %v318_v29 }
  0xa9   :  { %vm4637_vm1 = vmor %vm70_vm14, %vm114_vm11  ;;  %3448 = vmatprep.mubr.msk.f32.mxu1 %vm4099_vm0, %v4098_v3  ;;  %3468 = vmatprep.subr.mxu0 %v4098_v3  ;;  %v337_v30 = vand.u32 4294901760, %v4644_v4 }
  0xaa   :  { %3542 = vmatpush3.msra.mxu1 %v4266_v59  ;;  %3377 = vmatprep.mubr.msk.f32.mxu0 %vm4099_vm0, %v4098_v3  ;;  %v2918_v21 = vsel %vm4637_vm1, 1.0, %v4098_v3 }
  0xab   :  { %3449 = vmatmul.mubr.msk.f32.gmra.mxu1 %vm4615_vm10, %v4101_v40  ;;  %3469 = vmatpush3.msra.mxu0 %v4221_v38  ;;  %v4662_v29 = vsub.f32 %v2918_v21, %v2918_v21  ;;  %v338_v21 = vsub.f32 %v4644_v4, %v337_v30 }
  0xac   :  { %3543 = vmatprep.subr.mxu1 %v4098_v3  ;;  %3378 = vmatmul.mubr.f32.gmra.mxu0 %v319_v63  ;;  %v329_v63 = vand.u32 4294901760, %v328_v57 }
  0xad   :  { %3470 = vmatprep.subr.mxu0 %v4098_v3  ;;  %3544 = vmatpush3.msra.mxu1 %v4283_v2  ;;  %v347_v39 = vand.u32 4294901760, %v4662_v29  ;;  %v339_v57 = vand.u32 4294901760, %v338_v21 }
  0xae   :  { %3471 = vmatpush3.msra.mxu0 %v4264_v58  ;;  %3545 = vmatprep.subr.mxu1 %v4098_v3 }
  0xaf   :  { %3451 = vmatprep.mubr.msk.f32.mxu1 %vm4099_vm0, %v4098_v3  ;;  %3472 = vmatprep.subr.mxu0 %v4098_v3 }
  0xb0   :  { %3546 = vmatpush3.msra.mxu1 %v4300_v14  ;;  %3380 = vmatprep.mubr.msk.f32.mxu0 %vm4099_vm0, %v4098_v3 }
  0xb1   :  { %3452 = vmatmul.mubr.msk.f32.gmra.mxu1 %vm4637_vm1, %v4101_v40  ;;  %3473 = vmatpush3.msra.mxu0 %v4274_v61 }
  0xb2   :  { %3547 = vmatprep.subr.mxu1 %v4098_v3  ;;  %3381 = vmatmul.mubr.f32.gmra.mxu0 %v329_v63  ;;  %v348_v63 = vsub.f32 %v4662_v29, %v347_v39 }
  0xb3   :  { %3474 = vmatprep.subr.mxu0 %v4098_v3  ;;  %3548 = vmatpush3.msra.mxu1 %v4311_v35 }
  0xb4   :  { %3475 = vmatpush3.msra.mxu0 %v4281_v1  ;;  %3549 = vmatprep.subr.mxu1 %v4098_v3  ;;  %v349_v21 = vand.u32 4294901760, %v348_v63 }
  0xb5   :  { %3476 = vmatprep.subr.mxu0 %v4098_v3  ;;  %3550 = vmatpush3.msra.mxu1 %v4330_v44 }
  0xb6   :  { %3551 = vmatprep.mubr.msk.f32.mxu1 %vm4099_vm0, %v4098_v3  ;;  %3383 = vmatprep.mubr.msk.f32.mxu0 %vm4099_vm0, %v4098_v3 }
  0xb7   :  { %3477 = vmatpush3.msra.mxu0 %v4298_v13  ;;  %3552 = vmatmul.mubr.f32.vlgmr.msra.gmra.mxu1 %v247_v56  ;;  %v5757_v56 = vand.u32 4294901760, %v4476_v45 }
  0xb8   :  { %3384 = vmatmul.mubr.f32.gmra.mxu0 %v339_v57  ;;  %3478 = vmatprep.subr.mxu0 %v4098_v3 }
  0xb9   :  { %3479 = vmatpush3.msra.mxu0 %v4309_v33  ;;  %3554 = vmatprep.mubr.msk.f32.mxu1 %vm4099_vm0, %v4098_v3 }
  0xba   :  { %3480 = vmatprep.subr.mxu0 %v4098_v3  ;;  %3386 = vmatprep.mubr.msk.f32.mxu0 %vm4099_vm0, %v4098_v3 }
  0xbb   :  { %3481 = vmatpush3.msra.mxu0 %v4326_v43  ;;  %3555 = vmatmul.mubr.f32.gmra.mxu1 %v257_v62 }
  0xbc   :  { %3387 = vmatmul.mubr.f32.gmra.mxu0 %v349_v21  ;;  %3482 = vmatprep.subr.mxu0 %v4098_v3 }
  0xbd   :  { %3483 = vmatpush3.msra.mxu0 %v4337_v49  ;;  %3557 = vmatprep.mubr.msk.f32.mxu1 %vm4099_vm0, %v4098_v3 }
  0xbe   :  { %3484 = vmatprep.subr.mxu0 %v4098_v3  ;;  %3486 = vmatprep.mubr.msk.f32.mxu0 %vm4099_vm0, %v4098_v3 }
  0xbf   :  { %3485 = vmatpush3.msra.mxu0 %v4351_v60  ;;  %3558 = vmatmul.mubr.f32.gmra.mxu1 %v267_v15  ;;  %v5759_v15 = vand.u32 4294901760, %v4502_v7 }
  0xc0   :  { %3487 = vmatmul.mubr.f32.vlgmr.msra.gmra.mxu0 %v4427_v47  ;;  %3560 = vmatprep.mubr.msk.f32.mxu1 %vm4099_vm0, %v4098_v3 }
  0xc1   :  { %3489 = vmatprep.mubr.msk.f32.mxu0 %vm4099_vm0, %v4098_v3  ;;  %3649 = vmatprep.subr.mxu1 %v4098_v3 }
  0xc2   :  { %3650 = vmatpush3.msra.mxu1 %v4134_v5  ;;  %3584 = vmatprep.subr.mxu0 %v4098_v3  ;;  %v5758_v5 = vand.u32 4294901760, %v4165_v16  ;;  %v5763_v16 = vand.u32 4294901760, %v4183_v23  ;;  %v5768_v23 = vand.u32 4294901760, %v4197_v28  ;;  %v5772_v28 = vand.u32 4294901760, %v4274_v61 }
  0xc3   :  { %3561 = vmatmul.mubr.f32.gmra.mxu1 %v5757_v56  ;;  %3651 = vmatprep.subr.mxu1 %v4098_v3 }
  0xc4   :  { %3490 = vmatmul.mubr.f32.gmra.mxu0 %v4419_v37  ;;  %3563 = vmatprep.mubr.msk.f32.mxu1 %vm4099_vm0, %v4098_v3 }
  0xc5   :  { %3652 = vmatpush3.msra.mxu1 %v4149_v10  ;;  %3492 = vmatprep.mubr.msk.f32.mxu0 %vm4099_vm0, %v4098_v3  ;;  %v5760_v10 = vand.u32 4294901760, %v4528_v6 }
  0xc6   :  { %3653 = vmatprep.subr.mxu1 %v4098_v3  ;;  %3585 = vmatpush3.msra.mxu0 %v5758_v5 }
  0xc7   :  { %3564 = vmatmul.mubr.f32.gmra.mxu1 %v5759_v15  ;;  %3586 = vmatprep.subr.mxu0 %v4098_v3  ;;  %v1235_v15 = vld [vmem:[%s5707_s2] sm:$0xff] }
  0xc8   :  { %3493 = vmatmul.mubr.f32.gmra.mxu0 %v4449_v20  ;;  %3654 = vmatpush3.msra.mxu1 %v4151_v11  ;;  %v5761_v11 = vand.u32 4294901760, %v4554_v41 }
  0xc9   :  { %3655 = vmatprep.subr.mxu1 %v4098_v3  ;;  %3566 = vmatprep.mubr.msk.f32.mxu1 %vm4099_vm0, %v4098_v3 }
  0xca   :  { %3656 = vmatpush3.msra.mxu1 %v4153_v12  ;;  %3495 = vmatprep.mubr.msk.f32.mxu0 %vm4099_vm0, %v4098_v3  ;;  %v5762_v12 = vand.u32 4294901760, %v4180_v22  ;;  %v5767_v22 = vand.u32 4294901760, %v4609_v34 }
  0xcb   :  { %3567 = vmatmul.mubr.f32.gmra.mxu1 %v5760_v10  ;;  %3657 = vmatprep.subr.mxu1 %v4098_v3 }
  0xcc   :  { %3496 = vmatmul.mubr.f32.gmra.mxu0 %v4476_v45  ;;  %3658 = vmatpush3.msra.mxu1 %v4167_v17  ;;  %v5764_v17 = vand.u32 4294901760, %v4580_v0 }
  0xcd   :  { %3659 = vmatprep.subr.mxu1 %v4098_v3  ;;  %3569 = vmatprep.mubr.msk.f32.mxu1 %vm4099_vm0, %v4098_v3 }
  0xce   :  { %3660 = vmatpush3.msra.mxu1 %v4169_v18  ;;  %3498 = vmatprep.mubr.msk.f32.mxu0 %vm4099_vm0, %v4098_v3  ;;  %v5765_v18 = vand.u32 4294901760, %v4186_v24  ;;  %v5769_v24 = vand.u32 4294901760, %v4204_v32  ;;  %v5773_v32 = vand.u32 4294901760, %v4281_v1 }
  0xcf   :  { %3570 = vmatmul.mubr.f32.gmra.mxu1 %v5761_v11  ;;  %3587 = vmatpush3.msra.mxu0 %v5762_v12 }
  0xd0   :  { %3661 = vmatprep.subr.mxu1 %v4098_v3  ;;  %3499 = vmatmul.mubr.f32.gmra.mxu0 %v4502_v7 }
  0xd1   :  { %3588 = vmatprep.subr.mxu0 %v4098_v3  ;;  %3662 = vmatpush3.msra.mxu1 %v4171_v19  ;;  %v5766_v19 = vand.u32 4294901760, %v4193_v27  ;;  %v5771_v27 = vand.u32 4294901760, %v4264_v58  ;;  %v5778_v58 = vand.u32 4294901760, %v4351_v60 }
  0xd2   :  { %3589 = vmatpush3.msra.mxu0 %v5763_v16  ;;  %3663 = vmatprep.subr.mxu1 %v4098_v3 }
  0xd3   :  { %3572 = vmatprep.mubr.msk.f32.mxu1 %vm4099_vm0, %v4098_v3  ;;  %3590 = vmatprep.subr.mxu0 %v4098_v3 }
  0xd4   :  { %3664 = vmatpush3.msra.mxu1 %v4189_v25  ;;  %3501 = vmatprep.mubr.msk.f32.mxu0 %vm4099_vm0, %v4098_v3  ;;  %v5770_v25 = vand.u32 4294901760, %v4221_v38  ;;  %v5774_v38 = vand.u32 4294901760, %v4298_v13 }
  0xd5   :  { %3573 = vmatmul.mubr.f32.gmra.mxu1 %v5764_v17  ;;  %3591 = vmatpush3.msra.mxu0 %v5765_v18 }
  0xd6   :  { %3665 = vmatprep.subr.mxu1 %v4098_v3  ;;  %3502 = vmatmul.mubr.f32.gmra.mxu0 %v4528_v6 }
  0xd7   :  { %3592 = vmatprep.subr.mxu0 %v4098_v3  ;;  %3666 = vmatpush3.msra.mxu1 %v4245_v50  ;;  %v5775_v50 = vand.u32 4294901760, %v4309_v33 }
  0xd8   :  { %3593 = vmatpush3.msra.mxu0 %v5766_v19  ;;  %3667 = vmatprep.subr.mxu1 %v4098_v3 }
  0xd9   :  { %3575 = vmatprep.mubr.msk.f32.mxu1 %vm4099_vm0, %v4098_v3  ;;  %3594 = vmatprep.subr.mxu0 %v4098_v3 }
  0xda   :  { %3668 = vmatpush3.msra.mxu1 %v4252_v53  ;;  %3504 = vmatprep.mubr.msk.f32.mxu0 %vm4099_vm0, %v4098_v3  ;;  %v5776_v53 = vand.u32 4294901760, %v4326_v43 }
  0xdb   :  { %3576 = vmatmul.mubr.f32.gmra.mxu1 %v5767_v22  ;;  %3595 = vmatpush3.msra.mxu0 %v5768_v23 }
  0xdc   :  { %3669 = vmatprep.subr.mxu1 %v4098_v3  ;;  %3505 = vmatmul.mubr.f32.gmra.mxu0 %v4554_v41 }
  0xdd   :  { %3596 = vmatprep.subr.mxu0 %v4098_v3  ;;  %3670 = vmatpush3.msra.mxu1 %v4254_v54  ;;  %v5777_v54 = vand.u32 4294901760, %v4337_v49 }
  0xde   :  { %3597 = vmatpush3.msra.mxu0 %v5769_v24  ;;  %3671 = vmatprep.subr.mxu1 %v4098_v3 }
  0xdf   :  { %3578 = vmatprep.mubr.msk.f32.mxu1 %vm4099_vm0, %v4098_v3  ;;  %3598 = vmatprep.subr.mxu0 %v4098_v3 }
  0xe0   :  { %3672 = vmatpush3.msra.mxu1 %v4266_v59  ;;  %3507 = vmatprep.mubr.msk.f32.mxu0 %vm4099_vm0, %v4098_v3 }
  0xe1   :  { %3579 = vmatmul.mubr.f32.gmra.mxu1 %v337_v30  ;;  %3599 = vmatpush3.msra.mxu0 %v5770_v25 }
  0xe2   :  { %3673 = vmatprep.subr.mxu1 %v4098_v3  ;;  %3508 = vmatmul.mubr.f32.gmra.mxu0 %v4580_v0 }
  0xe3   :  { %3600 = vmatprep.subr.mxu0 %v4098_v3  ;;  %3674 = vmatpush3.msra.mxu1 %v4283_v2 }
  0xe4   :  { %3601 = vmatpush3.msra.mxu0 %v5771_v27  ;;  %3675 = vmatprep.subr.mxu1 %v4098_v3 }
  0xe5   :  { %3581 = vmatprep.mubr.msk.f32.mxu1 %vm4099_vm0, %v4098_v3  ;;  %3602 = vmatprep.subr.mxu0 %v4098_v3 }
  0xe6   :  { %3676 = vmatpush3.msra.mxu1 %v4300_v14  ;;  %3510 = vmatprep.mubr.msk.f32.mxu0 %vm4099_vm0, %v4098_v3 }
  0xe7   :  { %3582 = vmatmul.mubr.f32.gmra.mxu1 %v347_v39  ;;  %3603 = vmatpush3.msra.mxu0 %v5772_v28 }
  0xe8   :  { %3677 = vmatprep.subr.mxu1 %v4098_v3  ;;  %3511 = vmatmul.mubr.f32.gmra.mxu0 %v4609_v34 }
  0xe9   :  { %3604 = vmatprep.subr.mxu0 %v4098_v3  ;;  %3678 = vmatpush3.msra.mxu1 %v4311_v35 }
  0xea   :  { %3605 = vmatpush3.msra.mxu0 %v5773_v32  ;;  %3679 = vmatprep.subr.mxu1 %v4098_v3 }
  0xeb   :  { %3606 = vmatprep.subr.mxu0 %v4098_v3  ;;  %3680 = vmatpush3.msra.mxu1 %v4330_v44 }
  0xec   :  { %3681 = vmatprep.mubr.msk.f32.mxu1 %vm4099_vm0, %v4098_v3  ;;  %3513 = vmatprep.mubr.msk.f32.mxu0 %vm4099_vm0, %v4098_v3 }
  0xed   :  { %3607 = vmatpush3.msra.mxu0 %v5774_v38  ;;  %3682 = vmatmul.mubr.msk.f32.vlgmr.msra.gmra.mxu1 %vm4415_vm6, %v4101_v40 }
  0xee   :  { %3514 = vmatmul.mubr.f32.gmra.mxu0 %v4644_v4  ;;  %3608 = vmatprep.subr.mxu0 %v4098_v3 }
  0xef   :  { %3609 = vmatpush3.msra.mxu0 %v5775_v50  ;;  %3684 = vmatprep.mubr.msk.f32.mxu1 %vm4099_vm0, %v4098_v3 }
  0xf0   :  { %3610 = vmatprep.subr.mxu0 %v4098_v3  ;;  %3516 = vmatprep.mubr.msk.f32.mxu0 %vm4099_vm0, %v4098_v3 }
  0xf1   :  { %3611 = vmatpush3.msra.mxu0 %v5776_v53  ;;  %3685 = vmatmul.mubr.msk.f32.gmra.mxu1 %vm4408_vm5, %v4101_v40 }
  0xf2   :  { %3517 = vmatmul.mubr.f32.gmra.mxu0 %v4662_v29  ;;  %3612 = vmatprep.subr.mxu0 %v4098_v3 }
  0xf3   :  { %3613 = vmatpush3.msra.mxu0 %v5777_v54  ;;  %3687 = vmatprep.mubr.msk.f32.mxu1 %vm4099_vm0, %v4098_v3 }
  0xf4   :  { %3614 = vmatprep.subr.mxu0 %v4098_v3  ;;  %3616 = vmatprep.mubr.msk.f32.mxu0 %vm4099_vm0, %v4098_v3 }
  0xf5   :  { %3615 = vmatpush3.msra.mxu0 %v5778_v58  ;;  %3688 = vmatmul.mubr.msk.f32.gmra.mxu1 %vm4435_vm9, %v4101_v40 }
  0xf6   :  { %3617 = vmatmul.mubr.msk.f32.vlgmr.msra.gmra.mxu0 %vm4415_vm6, %v4101_v40  ;;  %3690 = vmatprep.mubr.msk.f32.mxu1 %vm4099_vm0, %v4098_v3 }
  0xf7   :  { %3619 = vmatprep.mubr.msk.f32.mxu0 %vm4099_vm0, %v4098_v3 }
  0xf9   :  { %3691 = vmatmul.mubr.msk.f32.gmra.mxu1 %vm4460_vm12, %v4101_v40 }
  0xfa   :  { %3620 = vmatmul.mubr.msk.f32.gmra.mxu0 %vm4408_vm5, %v4101_v40  ;;  %3693 = vmatprep.mubr.msk.f32.mxu1 %vm4099_vm0, %v4098_v3  ;;  %vm2891_vm5 = vcmask 523264  }
  0xfb   :  { %3622 = vmatprep.mubr.msk.f32.mxu0 %vm4099_vm0, %v4098_v3 }
  0xfd   :  { %3694 = vmatmul.mubr.msk.f32.gmra.mxu1 %vm4485_vm15, %v4101_v40 }
  0xfe   :  { %3623 = vmatmul.mubr.msk.f32.gmra.mxu0 %vm4435_vm9, %v4101_v40  ;;  %3696 = vmatprep.mubr.msk.f32.mxu1 %vm4099_vm0, %v4098_v3 }
  0xff   :  { %3625 = vmatprep.mubr.msk.f32.mxu0 %vm4099_vm0, %v4098_v3 }
 0x101   :  { %3697 = vmatmul.mubr.msk.f32.gmra.mxu1 %vm4511_vm3, %v4101_v40 }
 0x102   :  { %3626 = vmatmul.mubr.msk.f32.gmra.mxu0 %vm4460_vm12, %v4101_v40  ;;  %3699 = vmatprep.mubr.msk.f32.mxu1 %vm4099_vm0, %v4098_v3 }
 0x103   :  { %3628 = vmatprep.mubr.msk.f32.mxu0 %vm4099_vm0, %v4098_v3 }
 0x105   :  { %3700 = vmatmul.mubr.msk.f32.gmra.mxu1 %vm4537_vm8, %v4101_v40 }
 0x106   :  { %3629 = vmatmul.mubr.msk.f32.gmra.mxu0 %vm4485_vm15, %v4101_v40  ;;  %3702 = vmatprep.mubr.msk.f32.mxu1 %vm4099_vm0, %v4098_v3 }
 0x107   :  { %3631 = vmatprep.mubr.msk.f32.mxu0 %vm4099_vm0, %v4098_v3 }
 0x109   :  { %3703 = vmatmul.mubr.msk.f32.gmra.mxu1 %vm4563_vm13, %v4101_v40 }
 0x10a   :  { %3632 = vmatmul.mubr.msk.f32.gmra.mxu0 %vm4511_vm3, %v4101_v40  ;;  %3705 = vmatprep.mubr.msk.f32.mxu1 %vm4099_vm0, %v4098_v3 }
 0x10b   :  { %3634 = vmatprep.mubr.msk.f32.mxu0 %vm4099_vm0, %v4098_v3 }
 0x10d   :  { %3706 = vmatmul.mubr.msk.f32.gmra.mxu1 %vm4589_vm2, %v4101_v40 }
 0x10e   :  { %3635 = vmatmul.mubr.msk.f32.gmra.mxu0 %vm4537_vm8, %v4101_v40  ;;  %3708 = vmatprep.mubr.msk.f32.mxu1 %vm4099_vm0, %v4098_v3 }
 0x10f   :  { %3637 = vmatprep.mubr.msk.f32.mxu0 %vm4099_vm0, %v4098_v3 }
 0x111   :  { %3709 = vmatmul.mubr.msk.f32.gmra.mxu1 %vm4615_vm10, %v4101_v40 }
 0x112   :  { %3638 = vmatmul.mubr.msk.f32.gmra.mxu0 %vm4563_vm13, %v4101_v40  ;;  %3711 = vmatprep.mubr.msk.f32.mxu1 %vm4099_vm0, %v4098_v3 }
 0x113   :  { %3640 = vmatprep.mubr.msk.f32.mxu0 %vm4099_vm0, %v4098_v3 }
 0x115   :  { %3712 = vmatmul.mubr.msk.f32.gmra.mxu1 %vm4637_vm1, %v4101_v40 }
 0x116   :  { %3641 = vmatmul.mubr.msk.f32.gmra.mxu0 %vm4589_vm2, %v4101_v40 }
 0x117   :  { %3643 = vmatprep.mubr.msk.f32.mxu0 %vm4099_vm0, %v4098_v3 }
 0x11a   :  { %3644 = vmatmul.mubr.msk.f32.gmra.mxu0 %vm4615_vm10, %v4101_v40 }
 0x11b   :  { %3646 = vmatprep.mubr.msk.f32.mxu0 %vm4099_vm0, %v4098_v3  ;;  %vm1241_vm0 = vcmask 719872  }
 0x11c   :  { %v1243_v10 = vsel %vm1241_vm0, %v1235_v15, 0 }
 0x11d   :  { %v4991_v12 = vand.u32 4294901760, %v1243_v10 }
 0x11e   :  { %3647 = vmatmul.mubr.msk.f32.gmra.mxu0 %vm4637_vm1, %v4101_v40 }
 0x11f   :  { %v4996_v19 = vsub.f32 %v1243_v10, %v4991_v12  ;;  %3767 = vmatprep.mubr.f32.mxu1 %v4991_v12 }
 0x121   :  { %v5734_v23 = vand.u32 4294901760, %v4996_v19 }
 0x123   :  { %v1339_v25 = vsub.f32 %v4996_v19, %v5734_v23 }
 0x125   :  { %v1340_v38 = vand.u32 4294901760, %v1339_v25 }
 0x127   :  { %3736 = vmatprep.mubr.f32.mxu0 %v1340_v38 }
 0x146   :  { %v502_v31 = vpop.f32.mrf.mxu1 }
 0x148   :  { %v3423_v46 = vpop.f32.mrf.mxu1 }
 0x14a   :  { %v508_v59 = vpop.f32.mrf.mxu1 }
 0x14c   :  { %v3426_v61 = vpop.f32.mrf.mxu1 }
 0x14e   :  { %v514_v1 = vpop.f32.mrf.mxu1 }
 0x14f   :  { %v251_v2 = vpop.f32.mrf.mxu0 }
 0x150   :  { %v4971_v9 = vadd.f32 %v502_v31, %v251_v2  ;;  %v3429_v13 = vpop.f32.mrf.mxu1 }
 0x151   :  { %v3358_v14 = vpop.f32.mrf.mxu0 }
 0x152   :  { %v520_v33 = vpop.f32.mrf.mxu1 }
 0x153   :  { %v261_v26 = vpop.f32.mrf.mxu0 }
 0x154   :  { %v4973_v35 = vadd.f32 %v508_v59, %v261_v26  ;;  %v3432_v43 = vpop.f32.mrf.mxu1 }
 0x155   :  { %v3361_v3 = vpop.f32.mrf.mxu0 }
 0x156   :  { %v526_v44 = vpop.f32.mrf.mxu1 }
 0x157   :  { %v271_v48 = vpop.f32.mrf.mxu0 }
 0x158   :  { %v4975_v49 = vadd.f32 %v514_v1, %v271_v48  ;;  %v3435_v60 = vpop.f32.mrf.mxu1 }
 0x159   :  { %v3364_v8 = vpop.f32.mrf.mxu0 }
 0x15a   :  { %v532_v36 = vpop.f32.mrf.mxu1 }
 0x15b   :  { %v281_v37 = vpop.f32.mrf.mxu0 }
 0x15c   :  { %v4977_v40 = vadd.f32 %v520_v33, %v281_v37  ;;  %v3438_v47 = vpop.f32.mrf.mxu1 }
 0x15d   :  { %v3367_v55 = vpop.f32.mrf.mxu0 }
 0x15e   :  { %v538_v62 = vpop.f32.mrf.mxu1 }
 0x15f   :  { %v291_v20 = vpop.f32.mrf.mxu0 }
 0x160   :  { %v4979_v51 = vadd.f32 %v526_v44, %v291_v20  ;;  %v3441_v45 = vpop.f32.mrf.mxu1 }
 0x161   :  { %v3370_v39 = vpop.f32.mrf.mxu0 }
 0x162   :  { %v544_v7 = vpop.f32.mrf.mxu1 }
 0x163   :  { %v301_v6 = vpop.f32.mrf.mxu0 }
 0x164   :  { %v4981_v52 = vadd.f32 %v532_v36, %v301_v6  ;;  %v3444_v41 = vpop.f32.mrf.mxu1 }
 0x165   :  { %v3373_v34 = vpop.f32.mrf.mxu0 }
 0x166   :  { %v550_v0 = vpop.f32.mrf.mxu1 }
 0x167   :  { %v311_v42 = vpop.f32.mrf.mxu0 }
 0x168   :  { %v4983_v4 = vadd.f32 %v538_v62, %v311_v42  ;;  %v3447_v29 = vpop.f32.mrf.mxu1 }
 0x169   :  { %v3376_v30 = vpop.f32.mrf.mxu0 }
 0x16b   :  { %v556_v57 = vpop.f32.mrf.mxu1 }
 0x16c   :  { %v321_v63 = vpop.f32.mrf.mxu0 }
 0x16d   :  { %v4985_v21 = vadd.f32 %v544_v7, %v321_v63  ;;  %v3450_v56 = vpop.f32.mrf.mxu1 }
 0x16e   :  { %v3379_v5 = vpop.f32.mrf.mxu0 }
 0x171   :  { %v562_v11 = vpop.f32.mrf.mxu1 }
 0x172   :  { %v331_v16 = vpop.f32.mrf.mxu0 }
 0x173   :  { %v4993_v17 = vadd.f32 %v550_v0, %v331_v16  ;;  %v3453_v18 = vpop.f32.mrf.mxu1 }
 0x174   :  { %v3382_v22 = vpop.f32.mrf.mxu0 }
 0x177   :  { %v825_v24 = vpop.f32.mrf.mxu1 }
 0x178   :  { %v341_v27 = vpop.f32.mrf.mxu0 }
 0x179   :  { %v5003_v28 = vadd.f32 %v556_v57, %v341_v27  ;;  %v3553_v32 = vpop.f32.mrf.mxu1 }
 0x17a   :  { %v3385_v50 = vpop.f32.mrf.mxu0 }
 0x17b   :  { %v833_v53 = vpop.f32.mrf.mxu1 }
 0x17c   :  { %v351_v54 = vpop.f32.mrf.mxu0 }
 0x17d   :  { %v5005_v58 = vadd.f32 %v562_v11, %v351_v54  ;;  %v3556_v31 = vpop.f32.mrf.mxu1 }
 0x17e   :  { %v3388_v46 = vpop.f32.mrf.mxu0 }
 0x17f   :  { %v841_v59 = vpop.f32.mrf.mxu1 }
 0x180   :  { %v666_v61 = vpop.f32.mrf.mxu0 }
 0x181   :  { %v667_v1 = vadd.f32 %v666_v61, %v4971_v9  ;;  %v3559_v2 = vpop.f32.mrf.mxu1 }
 0x182   :  { %v3488_v13 = vpop.f32.mrf.mxu0 }
 0x183   :  { %v849_v14 = vpop.f32.mrf.mxu1  ;;  %v826_v33 = vadd.f32 %v825_v24, %v667_v1 }
 0x184   :  { %v673_v26 = vpop.f32.mrf.mxu0 }
 0x185   :  { %v674_v43 = vadd.f32 %v673_v26, %v4973_v35  ;;  %v3562_v3 = vpop.f32.mrf.mxu1 }
 0x186   :  { %v3491_v44 = vpop.f32.mrf.mxu0 }
 0x187   :  { %v857_v48 = vpop.f32.mrf.mxu1  ;;  %v834_v60 = vadd.f32 %v833_v53, %v674_v43 }
 0x188   :  { %v680_v8 = vpop.f32.mrf.mxu0 }
 0x189   :  { %v681_v36 = vadd.f32 %v680_v8, %v4975_v49  ;;  %v3565_v37 = vpop.f32.mrf.mxu1 }
 0x18a   :  { %v3494_v47 = vpop.f32.mrf.mxu0 }
 0x18b   :  { %v865_v55 = vpop.f32.mrf.mxu1  ;;  %v5010_v62 = vadd.f32 %v841_v59, %v681_v36 }
 0x18c   :  { %v687_v9 = vpop.f32.mrf.mxu0 }
 0x18d   :  { %v688_v20 = vadd.f32 %v687_v9, %v4977_v40  ;;  %v3568_v45 = vpop.f32.mrf.mxu1 }
 0x18e   :  { %v3497_v39 = vpop.f32.mrf.mxu0 }
 0x18f   :  { %v873_v7 = vpop.f32.mrf.mxu1  ;;  %v5013_v6 = vadd.f32 %v849_v14, %v688_v20 }
 0x190   :  { %v694_v35 = vpop.f32.mrf.mxu0 }
 0x191   :  { %v695_v41 = vadd.f32 %v694_v35, %v4979_v51  ;;  %v3571_v34 = vpop.f32.mrf.mxu1 }
 0x192   :  { %v3500_v0 = vpop.f32.mrf.mxu0 }
 0x193   :  { %v5016_v42 = vadd.f32 %v857_v48, %v695_v41 }
 0x195   :  { %v881_v49 = vpop.f32.mrf.mxu1 }
 0x196   :  { %v701_v29 = vpop.f32.mrf.mxu0 }
 0x197   :  { %v702_v30 = vadd.f32 %v701_v29, %v4981_v52  ;;  %v3574_v57 = vpop.f32.mrf.mxu1 }
 0x198   :  { %v3503_v63 = vpop.f32.mrf.mxu0 }
 0x199   :  { %v5019_v56 = vadd.f32 %v865_v55, %v702_v30 }
 0x19b   :  { %v889_v40 = vpop.f32.mrf.mxu1 }
 0x19c   :  { %v708_v5 = vpop.f32.mrf.mxu0 }
 0x19d   :  { %v709_v15 = vadd.f32 %v708_v5, %v4983_v4  ;;  %v3577_v10 = vpop.f32.mrf.mxu1 }
 0x19e   :  { %v3506_v11 = vpop.f32.mrf.mxu0 }
 0x19f   :  { %v5022_v16 = vadd.f32 %v873_v7, %v709_v15 }
 0x1a1   :  { %v5024_v51 = vpop.f32.mrf.mxu1 }
 0x1a2   :  { %v715_v18 = vpop.f32.mrf.mxu0 }
 0x1a3   :  { %v716_v22 = vadd.f32 %v715_v18, %v4985_v21  ;;  %v3580_v24 = vpop.f32.mrf.mxu1 }
 0x1a4   :  { %v3509_v25 = vpop.f32.mrf.mxu0 }
 0x1a5   :  { %v882_v52 = vadd.f32 %v881_v49, %v716_v22 }
 0x1a7   :  { %v5027_v27 = vpop.f32.mrf.mxu1 }
 0x1a8   :  { %v722_v32 = vpop.f32.mrf.mxu0 }
 0x1a9   :  { %v723_v38 = vadd.f32 %v722_v32, %v4993_v17  ;;  %v3583_v50 = vpop.f32.mrf.mxu1 }
 0x1aa   :  { %v3512_v53 = vpop.f32.mrf.mxu0 }
 0x1ab   :  { %v890_v4 = vadd.f32 %v889_v40, %v723_v38 }
 0x1ad   :  { %v1171_v54 = vpop.f32.mrf.mxu1 }
 0x1ae   :  { %v729_v31 = vpop.f32.mrf.mxu0 }
 0x1af   :  { %v3683_v46 = vpop.f32.mrf.mxu1  ;;  %v730_v24 = vadd.f32 %v729_v31, %v5003_v28 }
 0x1b0   :  { %v3515_v59 = vpop.f32.mrf.mxu0 }
 0x1b1   :  { %v1177_v61 = vpop.f32.mrf.mxu1  ;;  %v898_v59 = vadd.f32 %v5024_v51, %v730_v24 }
 0x1b2   :  { %v736_v1 = vpop.f32.mrf.mxu0 }
 0x1b3   :  { %v3686_v2 = vpop.f32.mrf.mxu1 }
 0x1b4   :  { %v3518_v13 = vpop.f32.mrf.mxu0 }
 0x1b5   :  { %v5030_v21 = vpop.f32.mrf.mxu1 }
 0x1b6   :  { %v1024_v14 = vpop.f32.mrf.mxu0 }
 0x1b7   :  { %v1025_v26 = vadd.f32 %v1024_v14, %v826_v33  ;;  %v3689_v43 = vpop.f32.mrf.mxu1 }
 0x1b8   :  { %v3618_v3 = vpop.f32.mrf.mxu0 }
 0x1b9   :  { %v5032_v44 = vadd.f32 %v1171_v54, %v1025_v26  ;;  %v5034_v17 = vpop.f32.mrf.mxu1  ;;  %v737_v54 = vadd.f32 %v736_v1, %v5005_v58 }
 0x1ba   :  { %v1030_v48 = vpop.f32.mrf.mxu0 }
 0x1bb   :  { %v1031_v8 = vadd.f32 %v1030_v48, %v834_v60  ;;  %v3692_v36 = vpop.f32.mrf.mxu1  ;;  %v906_v31 = vadd.f32 %v5027_v27, %v737_v54 }
 0x1bc   :  { %v3621_v37 = vpop.f32.mrf.mxu0 }
 0x1bd   :  { %v5036_v47 = vadd.f32 %v1177_v61, %v1031_v8  ;;  %v1195_v55 = vpop.f32.mrf.mxu1 }
 0x1be   :  { %v1036_v9 = vpop.f32.mrf.mxu0 }
 0x1bf   :  { %v3695_v20 = vpop.f32.mrf.mxu1  ;;  %v1037_v27 = vadd.f32 %v1036_v9, %v5010_v62 }
 0x1c0   :  { %v3624_v45 = vpop.f32.mrf.mxu0 }
 0x1c1   :  { %v1201_v39 = vpop.f32.mrf.mxu1 }
 0x1c2   :  { %v1042_v7 = vpop.f32.mrf.mxu0 }
 0x1c3   :  { %v3698_v35 = vpop.f32.mrf.mxu1 }
 0x1c4   :  { %v3627_v33 = vpop.f32.mrf.mxu0 }
 0x1c5   :  { %v1207_v41 = vpop.f32.mrf.mxu1 }
 0x1c6   :  { %v1048_v34 = vpop.f32.mrf.mxu0 }
 0x1c7   :  { %v3701_v0 = vpop.f32.mrf.mxu1 }
 0x1c8   :  { %v3630_v49 = vpop.f32.mrf.mxu0 }
 0x1c9   :  { %v1213_v29 = vpop.f32.mrf.mxu1 }
 0x1ca   :  { %v1054_v30 = vpop.f32.mrf.mxu0 }
 0x1cb   :  { %v3704_v57 = vpop.f32.mrf.mxu1  ;;  %v1055_v43 = vadd.f32 %v1054_v30, %v5019_v56 }
 0x1cc   :  { %v3633_v60 = vpop.f32.mrf.mxu0 }
 0x1cd   :  { %v1219_v63 = vpop.f32.mrf.mxu1  ;;  %v1202_v36 = vadd.f32 %v1201_v39, %v1055_v43 }
 0x1ce   :  { %v1060_v40 = vpop.f32.mrf.mxu0 }
 0x1cf   :  { %v3707_v5 = vpop.f32.mrf.mxu1  ;;  %v1061_v2 = vadd.f32 %v1060_v40, %v5022_v16  ;;  %v1043_v16 = vadd.f32 %v1042_v7, %v5013_v6 }
 0x1d0   :  { %v3636_v15 = vpop.f32.mrf.mxu0 }
 0x1d1   :  { %v1225_v10 = vpop.f32.mrf.mxu1  ;;  %v1208_v8 = vadd.f32 %v1207_v41, %v1061_v2  ;;  %v1190_v39 = vadd.f32 %v5034_v17, %v1043_v16  ;;  %v5068_v41 = vand.u32 4294901760, %v1202_v36  ;;  %v1237_v2 = vld [vmem:[%s5707_s2 + $0x10] sm:$0xff] }
 0x1d2   :  { %v1066_v11 = vpop.f32.mrf.mxu0 }
 0x1d3   :  { %v3710_v18 = vpop.f32.mrf.mxu1  ;;  %v1067_v46 = vadd.f32 %v1066_v11, %v882_v52  ;;  %v5059_v35 = vand.u32 4294901760, %v1208_v8  ;;  %v5094_v30 = vand.u32 4294901760, %v1190_v39  ;;  %v5100_v57 = vsub.f32 %v1202_v36, %v5068_v41 }
 0x1d4   :  { %v3639_v22 = vpop.f32.mrf.mxu0 }
 0x1d5   :  { %v1231_v25 = vpop.f32.mrf.mxu1  ;;  %v1214_v3 = vadd.f32 %v1213_v29, %v1067_v46  ;;  %v5085_v9 = vsub.f32 %v1208_v8, %v5059_v35  ;;  %v5125_v22 = vand.u32 4294901760, %v5036_v47 }
 0x1d6   :  { %v1072_v32 = vpop.f32.mrf.mxu0 }
 0x1d7   :  { %v1073_v38 = vadd.f32 %v1072_v32, %v890_v4  ;;  %v3713_v50 = vpop.f32.mrf.mxu1  ;;  %v1049_v4 = vadd.f32 %v1048_v34, %v5016_v42  ;;  %v5050_v37 = vand.u32 4294901760, %v1214_v3  ;;  %v1236_v42 = vld [vmem:[%s5707_s2 + $0x8] sm:$0xff]  ;;  %v5122_v18 = vand.u32 4294901760, %v5085_v9 }
 0x1d8   :  { %v3642_v53 = vpop.f32.mrf.mxu0  ;;  %v1246_v7 = vsel %vm1241_vm0, %v1236_v42, 0  ;;  %v5141_v50 = vand.u32 4294901760, %v5100_v57 }
 0x1d9   :  { %v1220_v13 = vadd.f32 %v1219_v63, %v1073_v38  ;;  %v1196_v45 = vadd.f32 %v1195_v55, %v1049_v4  ;;  %v5071_v34 = vsub.f32 %v1214_v3, %v5050_v37  ;;  %v1184_v55 = vadd.f32 %v5030_v21, %v1037_v27  ;;  %v1240_v27 = vld [vmem:[%s5707_s2 + $0x28] sm:$0xff] }
 0x1da   :  { %v1078_v61 = vpop.f32.mrf.mxu0  ;;  %v5097_v21 = vand.u32 4294901760, %v1246_v7  ;;  %v5144_v53 = vand.u32 4294901760, %v5032_v44  ;;  %v1445_v43 = vsub.f32 %v5100_v57, %v5141_v50 }
 0x1db   :  { %v1079_v14 = vadd.f32 %v1078_v61, %v898_v59  ;;  %v5045_v58 = vand.u32 4294901760, %v1220_v13  ;;  %v5082_v17 = vand.u32 4294901760, %v1196_v45  ;;  %v5108_v40 = vand.u32 4294901760, %v5071_v34 }
 0x1dc   :  { %v3645_v26 = vpop.f32.mrf.mxu0  ;;  %v5110_v5 = vand.u32 4294901760, %v1184_v55  ;;  %v5129_v24 = vsub.f32 %v1246_v7, %v5097_v21  ;;  %v1438_v59 = vsub.f32 %v5085_v9, %v5122_v18  ;;  %v5206_v16 = vand.u32 4294901760, %v1445_v43 }
 0x1dd   :  { %v1226_v28 = vadd.f32 %v1225_v10, %v1079_v14  ;;  %v5062_v33 = vsub.f32 %v1220_v13, %v5045_v58  ;;  %v5114_v15 = vsub.f32 %v1196_v45, %v5082_v17  ;;  %v1431_v38 = vsub.f32 %v5071_v34, %v5108_v40 }
 0x1de   :  { %v1084_v48 = vpop.f32.mrf.mxu0  ;;  %v5149_v54 = vsub.f32 %v1184_v55, %v5110_v5  ;;  %v5733_v13 = vand.u32 4294901760, %v5129_v24  ;;  %v5168_v14 = vsub.f32 %v5036_v47, %v5125_v22  ;;  %v1249_v47 = vsel %vm1241_vm0, %v1237_v2, 0 }
 0x1df   :  { %v5047_v52 = vand.u32 4294901760, %v1226_v28  ;;  %v1085_v51 = vadd.f32 %v1084_v48, %v906_v31  ;;  %v5092_v29 = vand.u32 4294901760, %v5062_v33  ;;  %v5158_v61 = vand.u32 4294901760, %v5114_v15 }
 0x1e0   :  { %v3648_v1 = vpop.f32.mrf.mxu0  ;;  %v5172_v26 = vand.u32 4294901760, %v1431_v38  ;;  %v5187_v31 = vsub.f32 %v5032_v44, %v5144_v53  ;;  %v5191_v4 = vand.u32 4294901760, %v1438_v59  ;;  %v5196_v8 = vand.u32 4294901760, %v5149_v54 }
 0x1e1   :  { %v5053_v56 = vsub.f32 %v1226_v28, %v5047_v52  ;;  %v1232_v20 = vadd.f32 %v1231_v25, %v1085_v51  ;;  %v1424_v11 = vsub.f32 %v5062_v33, %v5092_v29  ;;  %v5132_v25 = vsub.f32 %v1190_v39, %v5094_v30  ;;  %v1238_v28 = vld [vmem:[%s5707_s2 + $0x18] sm:$0xff] }
 0x1e2   :  { %v1452_v48 = vsub.f32 %v5114_v15, %v5158_v61  ;;  %v1349_v44 = vsub.f32 %v5129_v24, %v5733_v13  ;;  %v1252_v51 = vsel %vm1241_vm0, %v1238_v28, 0  ;;  %v5211_v36 = vand.u32 4294901760, %v5168_v14 }
 0x1e3   :  { %v5064_v6 = vand.u32 4294901760, %v1232_v20  ;;  %v5078_v62 = vand.u32 4294901760, %v5053_v56  ;;  %v5153_v46 = vand.u32 4294901760, %v1424_v11  ;;  %v5177_v3 = vand.u32 4294901760, %v5132_v25 }
 0x1e4   :  { %v5218_v42 = vand.u32 4294901760, %v1249_v47  ;;  %v5225_v45 = vand.u32 4294901760, %v1452_v48  ;;  %v1466_v39 = vsub.f32 %v5149_v54, %v5196_v8  ;;  %v5230_v7 = vand.u32 4294901760, %v5187_v31 }
 0x1e5   :  { %v5074_v0 = vsub.f32 %v1232_v20, %v5064_v6  ;;  %3714 = vmatprep.subr.mxu0 %v5064_v6  ;;  %v1417_v63 = vsub.f32 %v5053_v56, %v5078_v62  ;;  %v1459_v1 = vsub.f32 %v5132_v25, %v5177_v3  ;;  %v1239_v20 = vld [vmem:[%s5707_s2 + $0x20] sm:$0xff]  ;;  %v5232_v55 = vand.u32 4294901760, %v1252_v51 }
 0x1e6   :  { %3715 = vmatpush3.msra.mxu0 %v5064_v6  ;;  %v1473_v38 = vsub.f32 %v5168_v14, %v5211_v36  ;;  %v1258_v59 = vsel %vm1241_vm0, %v1240_v27, 0  ;;  %v5247_v2 = vsub.f32 %v1249_v47, %v5218_v42  ;;  %v5251_v43 = vand.u32 4294901760, %v1466_v39 }
 0x1e7   :  { %3716 = vmatprep.subr.mxu0 %v5047_v52  ;;  %v5089_v49 = vand.u32 4294901760, %v5074_v0  ;;  %v5136_v32 = vand.u32 4294901760, %v1417_v63  ;;  %v1255_v63 = vsel %vm1241_vm0, %v1239_v20, 0  ;;  %v5239_v11 = vand.u32 4294901760, %v1459_v1 }
 0x1e8   :  { %3717 = vmatpush3.msra.mxu0 %v5047_v52  ;;  %v1480_v28 = vsub.f32 %v5187_v31, %v5230_v7  ;;  %v5256_v48 = vsub.f32 %v1252_v51, %v5232_v55  ;;  %v5261_v1 = vand.u32 4294901760, %v1258_v59  ;;  %v5265_v47 = vand.u32 4294901760, %v1473_v38 }
 0x1e9   :  { %3718 = vmatprep.subr.mxu0 %v5045_v58  ;;  %v1410_v60 = vsub.f32 %v5074_v0, %v5089_v49  ;;  %v5731_v51 = vand.u32 4294901760, %v5247_v2 }
 0x1ea   :  { %3719 = vmatpush3.msra.mxu0 %v5045_v58  ;;  %v5272_v20 = vand.u32 4294901760, %v1480_v28  ;;  %v5732_v27 = vand.u32 4294901760, %v5256_v48 }
 0x1eb   :  { %3720 = vmatprep.subr.mxu0 %v5050_v37  ;;  %v5117_v10 = vand.u32 4294901760, %v1410_v60  ;;  %v1350_v60 = vand.u32 4294901760, %v1349_v44  ;;  %v5258_v44 = vand.u32 4294901760, %v1255_v63 }
 0x1ec   :  { %3721 = vmatpush3.msra.mxu0 %v5050_v37  ;;  %v1369_v38 = vsub.f32 %v5256_v48, %v5732_v27 }
 0x1ed   :  { %3722 = vmatprep.subr.mxu0 %v5059_v35  ;;  %3745 = vmatprep.subr.mxu1 %v5117_v10  ;;  %v5276_v39 = vsub.f32 %v1255_v63, %v5258_v44  ;;  %v1359_v63 = vsub.f32 %v5247_v2, %v5731_v51 }
 0x1ee   :  { %3723 = vmatpush3.msra.mxu0 %v5059_v35  ;;  %3746 = vmatpush3.msra.mxu1 %v5117_v10  ;;  %v1370_v27 = vand.u32 4294901760, %v1369_v38 }
 0x1ef   :  { %3724 = vmatprep.subr.mxu0 %v5068_v41  ;;  %3747 = vmatprep.subr.mxu1 %v5136_v32  ;;  %v1360_v51 = vand.u32 4294901760, %v1359_v63 }
 0x1f0   :  { %3725 = vmatpush3.msra.mxu0 %v5068_v41  ;;  %3748 = vmatpush3.msra.mxu1 %v5136_v32 }
 0x1f1   :  { %3726 = vmatprep.subr.mxu0 %v5082_v17  ;;  %3749 = vmatprep.subr.mxu1 %v5153_v46 }
 0x1f2   :  { %3727 = vmatpush3.msra.mxu0 %v5082_v17  ;;  %3750 = vmatpush3.msra.mxu1 %v5153_v46 }
 0x1f3   :  { %3728 = vmatprep.subr.mxu0 %v5094_v30  ;;  %3751 = vmatprep.subr.mxu1 %v5172_v26 }
 0x1f4   :  { %3729 = vmatpush3.msra.mxu0 %v5094_v30  ;;  %3752 = vmatpush3.msra.mxu1 %v5172_v26 }
 0x1f5   :  { %3730 = vmatprep.subr.mxu0 %v5110_v5  ;;  %3753 = vmatprep.subr.mxu1 %v5191_v4 }
 0x1f6   :  { %3731 = vmatpush3.msra.mxu0 %v5110_v5  ;;  %3754 = vmatpush3.msra.mxu1 %v5191_v4 }
 0x1f7   :  { %3732 = vmatprep.subr.mxu0 %v5125_v22  ;;  %3755 = vmatprep.subr.mxu1 %v5206_v16 }
 0x1f8   :  { %3733 = vmatpush3.msra.mxu0 %v5125_v22  ;;  %3756 = vmatpush3.msra.mxu1 %v5206_v16 }
 0x1f9   :  { %3734 = vmatprep.subr.mxu0 %v5144_v53  ;;  %3757 = vmatprep.subr.mxu1 %v5225_v45 }
 0x1fa   :  { %3735 = vmatpush3.msra.mxu0 %v5144_v53  ;;  %3758 = vmatpush3.msra.mxu1 %v5225_v45 }
 0x1fb   :  { %3759 = vmatprep.subr.mxu1 %v5239_v11  ;;  %3776 = vmatprep.subr.mxu0 %v5074_v0 }
 0x1fc   :  { %3737 = vmatmul.mubr.f32.vlgmr.msra.gmra.mxu0 %v1350_v60  ;;  %3760 = vmatpush3.msra.mxu1 %v5239_v11  ;;  %v5281_v60 = vsub.f32 %v1258_v59, %v5261_v1  ;;  %v1378_v59 = vand.u32 4294901760, %v5276_v39 }
 0x1fd   :  { %3777 = vmatpush3.msra.mxu0 %v5074_v0  ;;  %3761 = vmatprep.subr.mxu1 %v5251_v43 }
 0x1fe   :  { %3778 = vmatprep.subr.mxu0 %v5053_v56  ;;  %3762 = vmatpush3.msra.mxu1 %v5251_v43  ;;  %v1388_v28 = vand.u32 4294901760, %v5281_v60  ;;  %v1379_v13 = vsub.f32 %v5276_v39, %v1378_v59 }
 0x1ff   :  { %3779 = vmatpush3.msra.mxu0 %v5053_v56  ;;  %3763 = vmatprep.subr.mxu1 %v5265_v47 }
 0x200   :  { %3780 = vmatprep.subr.mxu0 %v5062_v33  ;;  %3764 = vmatpush3.msra.mxu1 %v5265_v47  ;;  %v1389_v23 = vsub.f32 %v5281_v60, %v1388_v28  ;;  %v1380_v63 = vand.u32 4294901760, %v1379_v13  ;;  %v5780_v13 = vand.u32 4294901760, %v5129_v24 }
 0x201   :  { %3781 = vmatpush3.msra.mxu0 %v5062_v33  ;;  %3765 = vmatprep.subr.mxu1 %v5272_v20 }
 0x202   :  { %3782 = vmatprep.subr.mxu0 %v5071_v34  ;;  %3766 = vmatpush3.msra.mxu1 %v5272_v20  ;;  %v1390_v38 = vand.u32 4294901760, %v1389_v23  ;;  %v5779_v23 = vand.u32 4294901760, %v4996_v19 }
 0x203   :  { %3783 = vmatpush3.msra.mxu0 %v5071_v34  ;;  %3807 = vmatprep.subr.mxu1 %v5064_v6 }
 0x204   :  { %3784 = vmatprep.subr.mxu0 %v5085_v9  ;;  %3768 = vmatmul.mubr.f32.vlgmr.msra.gmra.mxu1 %v5097_v21 }
 0x205   :  { %3785 = vmatpush3.msra.mxu0 %v5085_v9  ;;  %3808 = vmatpush3.msra.mxu1 %v5064_v6 }
 0x206   :  { %3786 = vmatprep.subr.mxu0 %v5100_v57  ;;  %3809 = vmatprep.subr.mxu1 %v5047_v52 }
 0x207   :  { %3787 = vmatpush3.msra.mxu0 %v5100_v57  ;;  %3810 = vmatpush3.msra.mxu1 %v5047_v52 }
 0x208   :  { %3788 = vmatprep.subr.mxu0 %v5114_v15  ;;  %3811 = vmatprep.subr.mxu1 %v5045_v58 }
 0x209   :  { %3789 = vmatpush3.msra.mxu0 %v5114_v15  ;;  %3812 = vmatpush3.msra.mxu1 %v5045_v58 }
 0x20a   :  { %3739 = vmatprep.mubr.f32.mxu0 %v1360_v51  ;;  %3790 = vmatprep.subr.mxu0 %v5132_v25 }
 0x20b   :  { %3813 = vmatprep.subr.mxu1 %v5050_v37  ;;  %3740 = vmatmul.mubr.f32.gmra.mxu0 %v1370_v27 }
 0x20c   :  { %3791 = vmatpush3.msra.mxu0 %v5132_v25  ;;  %3814 = vmatpush3.msra.mxu1 %v5050_v37 }
 0x20d   :  { %3792 = vmatprep.subr.mxu0 %v5149_v54  ;;  %3815 = vmatprep.subr.mxu1 %v5059_v35 }
 0x20e   :  { %3793 = vmatpush3.msra.mxu0 %v5149_v54  ;;  %3816 = vmatpush3.msra.mxu1 %v5059_v35 }
 0x20f   :  { %3742 = vmatprep.mubr.f32.mxu0 %v1380_v63  ;;  %3794 = vmatprep.subr.mxu0 %v5168_v14 }
 0x210   :  { %3817 = vmatprep.subr.mxu1 %v5068_v41  ;;  %3743 = vmatmul.mubr.f32.gmra.mxu0 %v1390_v38 }
 0x211   :  { %3795 = vmatpush3.msra.mxu0 %v5168_v14  ;;  %3818 = vmatpush3.msra.mxu1 %v5068_v41 }
 0x212   :  { %3796 = vmatprep.subr.mxu0 %v5187_v31  ;;  %3819 = vmatprep.subr.mxu1 %v5082_v17 }
 0x213   :  { %3797 = vmatpush3.msra.mxu0 %v5187_v31  ;;  %3820 = vmatpush3.msra.mxu1 %v5082_v17 }
 0x214   :  { %3770 = vmatprep.mubr.f32.mxu1 %v5218_v42  ;;  %3798 = vmatprep.mubr.f32.mxu0 %v4996_v19  ;;  %v5781_v19 = vand.u32 4294901760, %v5247_v2 }
 0x215   :  { %3821 = vmatprep.subr.mxu1 %v5094_v30  ;;  %3838 = vmatprep.subr.mxu0 %v5089_v49 }
 0x216   :  { %3771 = vmatmul.mubr.f32.gmra.mxu1 %v5232_v55  ;;  %3799 = vmatmul.mubr.f32.vlgmr.msra.gmra.mxu0 %v5129_v24  ;;  %v5782_v24 = vand.u32 4294901760, %v5256_v48 }
 0x217   :  { %3822 = vmatpush3.msra.mxu1 %v5094_v30  ;;  %3839 = vmatpush3.msra.mxu0 %v5089_v49 }
 0x218   :  { %3823 = vmatprep.subr.mxu1 %v5110_v5  ;;  %3840 = vmatprep.subr.mxu0 %v5078_v62 }
 0x219   :  { %3824 = vmatpush3.msra.mxu1 %v5110_v5  ;;  %3841 = vmatpush3.msra.mxu0 %v5078_v62 }
 0x21a   :  { %3773 = vmatprep.mubr.f32.mxu1 %v5258_v44  ;;  %3825 = vmatprep.subr.mxu1 %v5125_v22 }
 0x21b   :  { %3842 = vmatprep.subr.mxu0 %v5092_v29  ;;  %3774 = vmatmul.mubr.f32.gmra.mxu1 %v5261_v1 }
 0x21c   :  { %3826 = vmatpush3.msra.mxu1 %v5125_v22  ;;  %3843 = vmatpush3.msra.mxu0 %v5092_v29 }
 0x21d   :  { %3827 = vmatprep.subr.mxu1 %v5144_v53  ;;  %3844 = vmatprep.subr.mxu0 %v5108_v40 }
 0x21e   :  { %3828 = vmatpush3.msra.mxu1 %v5144_v53  ;;  %3845 = vmatpush3.msra.mxu0 %v5108_v40 }
 0x21f   :  { %3829 = vmatprep.mubr.f32.mxu1 %v5779_v23  ;;  %3846 = vmatprep.subr.mxu0 %v5122_v18 }
 0x220   :  { %3869 = vmatprep.subr.mxu1 %v5064_v6  ;;  %3830 = vmatmul.mubr.f32.vlgmr.msra.gmra.mxu1 %v5780_v13 }
 0x221   :  { %3847 = vmatpush3.msra.mxu0 %v5122_v18  ;;  %3870 = vmatpush3.msra.mxu1 %v5064_v6 }
 0x222   :  { %3848 = vmatprep.subr.mxu0 %v5141_v50  ;;  %3871 = vmatprep.subr.mxu1 %v5047_v52 }
 0x223   :  { %3849 = vmatpush3.msra.mxu0 %v5141_v50  ;;  %3872 = vmatpush3.msra.mxu1 %v5047_v52 }
 0x224   :  { %3850 = vmatprep.subr.mxu0 %v5158_v61  ;;  %3873 = vmatprep.subr.mxu1 %v5045_v58 }
 0x225   :  { %3801 = vmatprep.mubr.f32.mxu0 %v5247_v2  ;;  %3851 = vmatpush3.msra.mxu0 %v5158_v61  ;;  %v2952_v2 = vld [vmem:[%s5707_s2 + $0x30] sm:$0xff] }
 0x226   :  { %3874 = vmatpush3.msra.mxu1 %v5045_v58  ;;  %3802 = vmatmul.mubr.f32.gmra.mxu0 %v5256_v48  ;;  %v2953_v48 = vld [vmem:[%s5707_s2 + $0x38] sm:$0xff]  ;;  %v2059_v51 = vsel %vm1241_vm0, %v2952_v2, 0 }
 0x227   :  { %3852 = vmatprep.subr.mxu0 %v5177_v3  ;;  %3875 = vmatprep.subr.mxu1 %v5050_v37  ;;  %v2062_v27 = vsel %vm1241_vm0, %v2953_v48, 0 }
 0x228   :  { %3853 = vmatpush3.msra.mxu0 %v5177_v3  ;;  %3876 = vmatpush3.msra.mxu1 %v5050_v37 }
 0x229   :  { %3854 = vmatprep.subr.mxu0 %v5196_v8  ;;  %3877 = vmatprep.subr.mxu1 %v5059_v35 }
 0x22a   :  { %3804 = vmatprep.mubr.f32.mxu0 %v5276_v39  ;;  %3855 = vmatpush3.msra.mxu0 %v5196_v8  ;;  %v5423_v39 = vand.u32 4294901760, %v2059_v51 }
 0x22b   :  { %3878 = vmatpush3.msra.mxu1 %v5059_v35  ;;  %3805 = vmatmul.mubr.f32.gmra.mxu0 %v5281_v60  ;;  %v5427_v60 = vand.u32 4294901760, %v2062_v27 }
 0x22c   :  { %3856 = vmatprep.subr.mxu0 %v5211_v36  ;;  %3879 = vmatprep.subr.mxu1 %v5068_v41 }
 0x22d   :  { %3857 = vmatpush3.msra.mxu0 %v5211_v36  ;;  %3880 = vmatpush3.msra.mxu1 %v5068_v41 }
 0x22e   :  { %3858 = vmatprep.subr.mxu0 %v5230_v7  ;;  %3881 = vmatprep.subr.mxu1 %v5082_v17 }
 0x22f   :  { %3832 = vmatprep.mubr.f32.mxu1 %v5781_v19  ;;  %3859 = vmatpush3.msra.mxu0 %v5230_v7 }
 0x230   :  { %3860 = vmatprep.mubr.f32.mxu0 %v4991_v12  ;;  %3882 = vmatpush3.msra.mxu1 %v5082_v17 }
 0x231   :  { %3833 = vmatmul.mubr.f32.gmra.mxu1 %v5782_v24  ;;  %3861 = vmatmul.mubr.f32.vlgmr.msra.gmra.mxu0 %v5097_v21 }
 0x232   :  { %3883 = vmatprep.subr.mxu1 %v5094_v30  ;;  %3900 = vmatprep.subr.mxu0 %v5064_v6 }
 0x233   :  { %3884 = vmatpush3.msra.mxu1 %v5094_v30  ;;  %3901 = vmatpush3.msra.mxu0 %v5064_v6 }
 0x234   :  { %3885 = vmatprep.subr.mxu1 %v5110_v5  ;;  %3902 = vmatprep.subr.mxu0 %v5047_v52 }
 0x235   :  { %3835 = vmatprep.mubr.f32.mxu1 %v1378_v59  ;;  %3863 = vmatprep.mubr.f32.mxu0 %v5218_v42  ;;  %v5436_v59 = vsub.f32 %v2059_v51, %v5423_v39 }
 0x236   :  { %3886 = vmatpush3.msra.mxu1 %v5110_v5  ;;  %3903 = vmatpush3.msra.mxu0 %v5047_v52 }
 0x237   :  { %3836 = vmatmul.mubr.f32.gmra.mxu1 %v1388_v28  ;;  %3864 = vmatmul.mubr.f32.gmra.mxu0 %v5232_v55  ;;  %v5441_v28 = vsub.f32 %v2062_v27, %v5427_v60 }
 0x238   :  { %3887 = vmatprep.subr.mxu1 %v5125_v22  ;;  %3904 = vmatprep.subr.mxu0 %v5045_v58 }
 0x239   :  { %3888 = vmatpush3.msra.mxu1 %v5125_v22  ;;  %3905 = vmatpush3.msra.mxu0 %v5045_v58 }
 0x23a   :  { %3889 = vmatprep.subr.mxu1 %v5144_v53  ;;  %3906 = vmatprep.subr.mxu0 %v5050_v37 }
 0x23b   :  { %3866 = vmatprep.mubr.f32.mxu0 %v5258_v44  ;;  %3890 = vmatpush3.msra.mxu1 %v5144_v53 }
 0x23c   :  { %3891 = vmatprep.mubr.f32.mxu1 %v4991_v12  ;;  %3907 = vmatpush3.msra.mxu0 %v5050_v37  ;;  %v2154_v12 = vand.u32 4294901760, %v5436_v59 }
 0x23d   :  { %3867 = vmatmul.mubr.f32.gmra.mxu0 %v5261_v1  ;;  %3892 = vmatmul.mubr.f32.vlgmr.msra.gmra.mxu1 %v5097_v21  ;;  %v2164_v21 = vand.u32 4294901760, %v5441_v28 }
 0x23e   :  { %3908 = vmatprep.subr.mxu0 %v5059_v35  ;;  %3931 = vmatprep.subr.mxu1 %v5117_v10 }
 0x23f   :  { %3909 = vmatpush3.msra.mxu0 %v5059_v35  ;;  %3932 = vmatpush3.msra.mxu1 %v5117_v10  ;;  %v2954_v10 = vld [vmem:[%s5707_s2 + $0x40] sm:$0xff] }
 0x240   :  { %3910 = vmatprep.subr.mxu0 %v5068_v41  ;;  %3933 = vmatprep.subr.mxu1 %v5136_v32 }
 0x241   :  { %3894 = vmatprep.mubr.f32.mxu1 %v5218_v42  ;;  %3911 = vmatpush3.msra.mxu0 %v5068_v41  ;;  %v2165_v42 = vsub.f32 %v5441_v28, %v2164_v21 }
 0x242   :  { %3934 = vmatpush3.msra.mxu1 %v5136_v32  ;;  %3912 = vmatprep.subr.mxu0 %v5082_v17  ;;  %v2955_v32 = vld [vmem:[%s5707_s2 + $0x48] sm:$0xff] }
 0x243   :  { %3895 = vmatmul.mubr.f32.gmra.mxu1 %v5232_v55  ;;  %3935 = vmatprep.subr.mxu1 %v5153_v46  ;;  %v2065_v55 = vsel %vm1241_vm0, %v2954_v10, 0 }
 0x244   :  { %3913 = vmatpush3.msra.mxu0 %v5082_v17  ;;  %3936 = vmatpush3.msra.mxu1 %v5153_v46  ;;  %v2155_v46 = vsub.f32 %v5436_v59, %v2154_v12  ;;  %v5484_v38 = vand.u32 4294901760, %v2065_v55 }
 0x245   :  { %3914 = vmatprep.subr.mxu0 %v5094_v30  ;;  %3937 = vmatprep.subr.mxu1 %v5172_v26 }
 0x246   :  { %3897 = vmatprep.mubr.f32.mxu1 %v5258_v44  ;;  %3915 = vmatpush3.msra.mxu0 %v5094_v30  ;;  %v2068_v44 = vsel %vm1241_vm0, %v2955_v32, 0  ;;  %v2156_v63 = vand.u32 4294901760, %v2155_v46 }
 0x247   :  { %3938 = vmatpush3.msra.mxu1 %v5172_v26  ;;  %3916 = vmatprep.subr.mxu0 %v5110_v5  ;;  %v2956_v26 = vld [vmem:[%s5707_s2 + $0x50] sm:$0xff]  ;;  %v5491_v23 = vand.u32 4294901760, %v2068_v44 }
 0x248   :  { %3898 = vmatmul.mubr.f32.gmra.mxu1 %v5261_v1  ;;  %3939 = vmatprep.subr.mxu1 %v5191_v4  ;;  %v2957_v1 = vld [vmem:[%s5707_s2 + $0x58] sm:$0xff]  ;;  %v2071_v13 = vsel %vm1241_vm0, %v2956_v26, 0  ;;  %s4102_s2 = smov 64  }
 0x249   :  { %3917 = vmatpush3.msra.mxu0 %v5110_v5  ;;  %3940 = vmatpush3.msra.mxu1 %v5191_v4  ;;  %v2166_v4 = vand.u32 4294901760, %v2165_v42  ;;  %v2074_v19 = vsel %vm1241_vm0, %v2957_v1, 0  ;;  %v5505_v24 = vsub.f32 %v2068_v44, %v5491_v23  ;;  %v5507_v2 = vand.u32 4294901760, %v2071_v13 }
 0x24a   :  { %3918 = vmatprep.subr.mxu0 %v5125_v22  ;;  %3941 = vmatprep.subr.mxu1 %v5206_v16 }
 0x24b   :  { %3919 = vmatpush3.msra.mxu0 %v5125_v22  ;;  %3942 = vmatpush3.msra.mxu1 %v5206_v16  ;;  %v5501_v16 = vsub.f32 %v2065_v55, %v5484_v38 }
 0x24c   :  { %3920 = vmatprep.subr.mxu0 %v5144_v53  ;;  %3943 = vmatprep.subr.mxu1 %v5225_v45 }
 0x24d   :  { %3921 = vmatpush3.msra.mxu0 %v5144_v53  ;;  %3944 = vmatpush3.msra.mxu1 %v5225_v45  ;;  %v5511_v45 = vand.u32 4294901760, %v2074_v19  ;;  %v2174_v48 = vand.u32 4294901760, %v5501_v16 }
 0x24e   :  { %3922 = vmatprep.mubr.f32.mxu0 %v2156_v63  ;;  %3945 = vmatprep.subr.mxu1 %v5239_v11 }
 0x24f   :  { %3962 = vmatprep.subr.mxu0 %v5074_v0  ;;  %3923 = vmatmul.mubr.f32.vlgmr.msra.gmra.mxu0 %v2166_v4  ;;  %v5527_v51 = vsub.f32 %v2074_v19, %v5511_v45 }
 0x250   :  { %3946 = vmatpush3.msra.mxu1 %v5239_v11  ;;  %3963 = vmatpush3.msra.mxu0 %v5074_v0  ;;  %v2184_v11 = vand.u32 4294901760, %v5505_v24  ;;  %v5522_v0 = vsub.f32 %v2071_v13, %v5507_v2 }
 0x251   :  { %3947 = vmatprep.subr.mxu1 %v5251_v43  ;;  %3964 = vmatprep.subr.mxu0 %v5053_v56 }
 0x252   :  { %3948 = vmatpush3.msra.mxu1 %v5251_v43  ;;  %3965 = vmatpush3.msra.mxu0 %v5053_v56  ;;  %v2175_v56 = vsub.f32 %v5501_v16, %v2174_v48  ;;  %v2194_v43 = vand.u32 4294901760, %v5522_v0 }
 0x253   :  { %3949 = vmatprep.subr.mxu1 %v5265_v47  ;;  %3966 = vmatprep.subr.mxu0 %v5062_v33 }
 0x254   :  { %3950 = vmatpush3.msra.mxu1 %v5265_v47  ;;  %3967 = vmatpush3.msra.mxu0 %v5062_v33  ;;  %v2185_v33 = vsub.f32 %v5505_v24, %v2184_v11  ;;  %v2176_v47 = vand.u32 4294901760, %v2175_v56  ;;  %v2195_v27 = vsub.f32 %v5522_v0, %v2194_v43 }
 0x255   :  { %3951 = vmatprep.subr.mxu1 %v5272_v20  ;;  %3968 = vmatprep.subr.mxu0 %v5071_v34 }
 0x256   :  { %3952 = vmatpush3.msra.mxu1 %v5272_v20  ;;  %3969 = vmatpush3.msra.mxu0 %v5071_v34  ;;  %v2204_v34 = vand.u32 4294901760, %v5527_v51  ;;  %v2186_v20 = vand.u32 4294901760, %v2185_v33 }
 0x257   :  { %3953 = vmatprep.mubr.f32.mxu1 %v5423_v39  ;;  %3970 = vmatprep.subr.mxu0 %v5085_v9 }
 0x258   :  { %3993 = vmatprep.subr.mxu1 %v5064_v6  ;;  %3954 = vmatmul.mubr.f32.vlgmr.msra.gmra.mxu1 %v5427_v60 }
 0x259   :  { %3971 = vmatpush3.msra.mxu0 %v5085_v9  ;;  %3994 = vmatpush3.msra.mxu1 %v5064_v6  ;;  %v2205_v9 = vsub.f32 %v5527_v51, %v2204_v34 }
 0x25a   :  { %3972 = vmatprep.subr.mxu0 %v5100_v57  ;;  %3995 = vmatprep.subr.mxu1 %v5047_v52 }
 0x25b   :  { %3973 = vmatpush3.msra.mxu0 %v5100_v57  ;;  %3996 = vmatpush3.msra.mxu1 %v5047_v52  ;;  %v2196_v57 = vand.u32 4294901760, %v2195_v27  ;;  %v2206_v10 = vand.u32 4294901760, %v2205_v9 }
 0x25c   :  { %3974 = vmatprep.subr.mxu0 %v5114_v15  ;;  %3997 = vmatprep.subr.mxu1 %v5045_v58 }
 0x25d   :  { %3975 = vmatpush3.msra.mxu0 %v5114_v15  ;;  %3998 = vmatpush3.msra.mxu1 %v5045_v58 }
 0x25e   :  { %3925 = vmatprep.mubr.f32.mxu0 %v2176_v47  ;;  %3976 = vmatprep.subr.mxu0 %v5132_v25 }
 0x25f   :  { %3999 = vmatprep.subr.mxu1 %v5050_v37  ;;  %3926 = vmatmul.mubr.f32.gmra.mxu0 %v2186_v20 }
 0x260   :  { %3977 = vmatpush3.msra.mxu0 %v5132_v25  ;;  %4000 = vmatpush3.msra.mxu1 %v5050_v37 }
 0x261   :  { %3978 = vmatprep.subr.mxu0 %v5149_v54  ;;  %4001 = vmatprep.subr.mxu1 %v5059_v35 }
 0x262   :  { %3979 = vmatpush3.msra.mxu0 %v5149_v54  ;;  %4002 = vmatpush3.msra.mxu1 %v5059_v35 }
 0x263   :  { %3928 = vmatprep.mubr.f32.mxu0 %v2196_v57  ;;  %3980 = vmatprep.subr.mxu0 %v5168_v14 }
 0x264   :  { %4003 = vmatprep.subr.mxu1 %v5068_v41  ;;  %3929 = vmatmul.mubr.f32.gmra.mxu0 %v2206_v10 }
 0x265   :  { %3981 = vmatpush3.msra.mxu0 %v5168_v14  ;;  %4004 = vmatpush3.msra.mxu1 %v5068_v41 }
 0x266   :  { %3982 = vmatprep.subr.mxu0 %v5187_v31  ;;  %4005 = vmatprep.subr.mxu1 %v5082_v17 }
 0x267   :  { %3983 = vmatpush3.msra.mxu0 %v5187_v31  ;;  %4006 = vmatpush3.msra.mxu1 %v5082_v17 }
 0x268   :  { %3956 = vmatprep.mubr.f32.mxu1 %v5484_v38  ;;  %3984 = vmatprep.mubr.f32.mxu0 %v5436_v59 }
 0x269   :  { %4007 = vmatprep.subr.mxu1 %v5094_v30  ;;  %4024 = vmatprep.subr.mxu0 %v5089_v49 }
 0x26a   :  { %3957 = vmatmul.mubr.f32.gmra.mxu1 %v5491_v23  ;;  %3985 = vmatmul.mubr.f32.vlgmr.msra.gmra.mxu0 %v5441_v28 }
 0x26b   :  { %4008 = vmatpush3.msra.mxu1 %v5094_v30  ;;  %4025 = vmatpush3.msra.mxu0 %v5089_v49 }
 0x26c   :  { %4009 = vmatprep.subr.mxu1 %v5110_v5  ;;  %4026 = vmatprep.subr.mxu0 %v5078_v62 }
 0x26d   :  { %4010 = vmatpush3.msra.mxu1 %v5110_v5  ;;  %4027 = vmatpush3.msra.mxu0 %v5078_v62 }
 0x26e   :  { %3959 = vmatprep.mubr.f32.mxu1 %v5507_v2  ;;  %4011 = vmatprep.subr.mxu1 %v5125_v22 }
 0x26f   :  { %4028 = vmatprep.subr.mxu0 %v5092_v29  ;;  %3960 = vmatmul.mubr.f32.gmra.mxu1 %v5511_v45 }
 0x270   :  { %4012 = vmatpush3.msra.mxu1 %v5125_v22  ;;  %4029 = vmatpush3.msra.mxu0 %v5092_v29 }
 0x271   :  { %4013 = vmatprep.subr.mxu1 %v5144_v53  ;;  %4030 = vmatprep.subr.mxu0 %v5108_v40 }
 0x272   :  { %4014 = vmatpush3.msra.mxu1 %v5144_v53  ;;  %4031 = vmatpush3.msra.mxu0 %v5108_v40 }
 0x273   :  { %4015 = vmatprep.mubr.f32.mxu1 %v2154_v12  ;;  %4032 = vmatprep.subr.mxu0 %v5122_v18 }
 0x274   :  { %4055 = vmatprep.subr.mxu1 %v5064_v6  ;;  %4016 = vmatmul.mubr.f32.vlgmr.msra.gmra.mxu1 %v2164_v21 }
 0x275   :  { %4033 = vmatpush3.msra.mxu0 %v5122_v18  ;;  %4056 = vmatpush3.msra.mxu1 %v5064_v6 }
 0x276   :  { %4034 = vmatprep.subr.mxu0 %v5141_v50  ;;  %4057 = vmatprep.subr.mxu1 %v5047_v52 }
 0x277   :  { %4035 = vmatpush3.msra.mxu0 %v5141_v50  ;;  %4058 = vmatpush3.msra.mxu1 %v5047_v52 }
 0x278   :  { %4036 = vmatprep.subr.mxu0 %v5158_v61  ;;  %4059 = vmatprep.subr.mxu1 %v5045_v58 }
 0x279   :  { %3987 = vmatprep.mubr.f32.mxu0 %v5501_v16  ;;  %4037 = vmatpush3.msra.mxu0 %v5158_v61 }
 0x27a   :  { %4060 = vmatpush3.msra.mxu1 %v5045_v58  ;;  %3988 = vmatmul.mubr.f32.gmra.mxu0 %v5505_v24 }
 0x27b   :  { %4038 = vmatprep.subr.mxu0 %v5177_v3  ;;  %4061 = vmatprep.subr.mxu1 %v5050_v37 }
 0x27c   :  { %4039 = vmatpush3.msra.mxu0 %v5177_v3  ;;  %4062 = vmatpush3.msra.mxu1 %v5050_v37 }
 0x27d   :  { %4040 = vmatprep.subr.mxu0 %v5196_v8  ;;  %4063 = vmatprep.subr.mxu1 %v5059_v35 }
 0x27e   :  { %3990 = vmatprep.mubr.f32.mxu0 %v5522_v0  ;;  %4041 = vmatpush3.msra.mxu0 %v5196_v8 }
 0x27f   :  { %4064 = vmatpush3.msra.mxu1 %v5059_v35  ;;  %3991 = vmatmul.mubr.f32.gmra.mxu0 %v5527_v51 }
 0x280   :  { %4042 = vmatprep.subr.mxu0 %v5211_v36  ;;  %4065 = vmatprep.subr.mxu1 %v5068_v41 }
 0x281   :  { %4043 = vmatpush3.msra.mxu0 %v5211_v36  ;;  %4066 = vmatpush3.msra.mxu1 %v5068_v41 }
 0x282   :  { %4044 = vmatprep.subr.mxu0 %v5230_v7  ;;  %4067 = vmatprep.subr.mxu1 %v5082_v17 }
 0x283   :  { %4018 = vmatprep.mubr.f32.mxu1 %v2174_v48  ;;  %4045 = vmatpush3.msra.mxu0 %v5230_v7 }
 0x284   :  { %4046 = vmatprep.mubr.f32.mxu0 %v5423_v39  ;;  %4068 = vmatpush3.msra.mxu1 %v5082_v17 }
 0x285   :  { %4019 = vmatmul.mubr.f32.gmra.mxu1 %v2184_v11  ;;  %4047 = vmatmul.mubr.f32.vlgmr.msra.gmra.mxu0 %v5427_v60 }
 0x286   :  { %4069 = vmatprep.subr.mxu1 %v5094_v30  ;;  %4021 = vmatprep.mubr.f32.mxu1 %v2194_v43 }
 0x287   :  { %4070 = vmatpush3.msra.mxu1 %v5094_v30  ;;  %4049 = vmatprep.mubr.f32.mxu0 %v5484_v38 }
 0x288   :  { %4071 = vmatprep.subr.mxu1 %v5110_v5 }
 0x289   :  { %4072 = vmatpush3.msra.mxu1 %v5110_v5  ;;  %4050 = vmatmul.mubr.f32.gmra.mxu0 %v5491_v23 }
 0x28a   :  { %4022 = vmatmul.mubr.f32.gmra.mxu1 %v2204_v34  ;;  %4073 = vmatprep.subr.mxu1 %v5125_v22 }
 0x28b   :  { %4074 = vmatpush3.msra.mxu1 %v5125_v22  ;;  %4052 = vmatprep.mubr.f32.mxu0 %v5507_v2 }
 0x28c   :  { %4075 = vmatprep.subr.mxu1 %v5144_v53  ;;  %4077 = vmatprep.mubr.f32.mxu1 %v5423_v39 }
 0x28d   :  { %4076 = vmatpush3.msra.mxu1 %v5144_v53  ;;  %4053 = vmatmul.mubr.f32.gmra.mxu0 %v5511_v45 }
 0x28e   :  { %4078 = vmatmul.mubr.f32.vlgmr.msra.gmra.mxu1 %v5427_v60 }
 0x28f   :  { %4080 = vmatprep.mubr.f32.mxu1 %v5484_v38 }
 0x292   :  { %4081 = vmatmul.mubr.f32.gmra.mxu1 %v5491_v23 }
 0x293   :  { %4083 = vmatprep.mubr.f32.mxu1 %v5507_v2 }
 0x296   :  { %4084 = vmatmul.mubr.f32.gmra.mxu1 %v5511_v45 }
 0x2bc   :  { %v3738_v58 = vpop.f32.mrf.mxu0 }
 0x2be   :  { %v1342_v35 = vpop.f32.mrf.mxu0 }
 0x2c4   :  { %v3769_v52 = vpop.f32.mrf.mxu1 }
 0x2c5   :  { %v1525_v37 = vadd.f32 %v3769_v52, %v3738_v58 }
 0x2c6   :  { %v1518_v6 = vpop.f32.mrf.mxu1 }
 0x2c7   :  { %v1519_v41 = vadd.f32 %v1518_v6, %v1342_v35 }
 0x2cb   :  { %v3741_v62 = vpop.f32.mrf.mxu0 }
 0x2cd   :  { %v1362_v17 = vpop.f32.mrf.mxu0 }
 0x2d0   :  { %v3744_v49 = vpop.f32.mrf.mxu0 }
 0x2d2   :  { %v1382_v29 = vpop.f32.mrf.mxu0 }
 0x2d6   :  { %v3772_v30 = vpop.f32.mrf.mxu1  ;;  %v3800_v40 = vpop.f32.mrf.mxu0 }
 0x2d7   :  { %v1537_v5 = vadd.f32 %v3772_v30, %v3741_v62  ;;  %v1650_v15 = vadd.f32 %v3800_v40, %v1525_v37 }
 0x2d8   :  { %v1530_v18 = vpop.f32.mrf.mxu1  ;;  %v1642_v22 = vpop.f32.mrf.mxu0 }
 0x2d9   :  { %v1531_v25 = vadd.f32 %v1530_v18, %v1362_v17  ;;  %v1643_v50 = vadd.f32 %v1642_v22, %v1519_v41 }
 0x2db   :  { %v3775_v53 = vpop.f32.mrf.mxu1 }
 0x2dc   :  { %v1549_v54 = vadd.f32 %v3775_v53, %v3744_v49 }
 0x2dd   :  { %v1542_v61 = vpop.f32.mrf.mxu1 }
 0x2de   :  { %v1543_v14 = vadd.f32 %v1542_v61, %v1382_v29 }
 0x2e0   :  { %v3831_v3 = vpop.f32.mrf.mxu1 }
 0x2e1   :  { %v1770_v31 = vadd.f32 %v3831_v3, %v1650_v15 }
 0x2e2   :  { %v1761_v8 = vpop.f32.mrf.mxu1 }
 0x2e3   :  { %v1762_v36 = vadd.f32 %v1761_v8, %v1643_v50 }
 0x2e6   :  { %v3803_v7 = vpop.f32.mrf.mxu0 }
 0x2e7   :  { %v1664_v39 = vadd.f32 %v3803_v7, %v1537_v5 }
 0x2e8   :  { %v1656_v60 = vpop.f32.mrf.mxu0 }
 0x2e9   :  { %v1657_v59 = vadd.f32 %v1656_v60, %v1531_v25 }
 0x2eb   :  { %v3806_v28 = vpop.f32.mrf.mxu0 }
 0x2ec   :  { %v1678_v12 = vadd.f32 %v3806_v28, %v1549_v54 }
 0x2ed   :  { %v1670_v21 = vpop.f32.mrf.mxu0 }
 0x2ee   :  { %v1671_v32 = vadd.f32 %v1670_v21, %v1543_v14 }
 0x2f1   :  { %v3834_v46 = vpop.f32.mrf.mxu1  ;;  %v3862_v42 = vpop.f32.mrf.mxu0 }
 0x2f2   :  { %v1786_v55 = vadd.f32 %v3834_v46, %v1664_v39  ;;  %v1912_v44 = vadd.f32 %v3862_v42, %v1770_v31 }
 0x2f3   :  { %v1777_v26 = vpop.f32.mrf.mxu1  ;;  %v1905_v63 = vpop.f32.mrf.mxu0 }
 0x2f4   :  { %v1778_v38 = vadd.f32 %v1777_v26, %v1657_v59  ;;  %v1906_v1 = vadd.f32 %v1905_v63, %v1762_v36 }
 0x2f7   :  { %v3837_v4 = vpop.f32.mrf.mxu1  ;;  %v3865_v23 = vpop.f32.mrf.mxu0 }
 0x2f8   :  { %v1802_v13 = vadd.f32 %v3837_v4, %v1678_v12  ;;  %v1924_v19 = vadd.f32 %v3865_v23, %v1786_v55 }
 0x2f9   :  { %v1793_v16 = vpop.f32.mrf.mxu1  ;;  %v1917_v24 = vpop.f32.mrf.mxu0 }
 0x2fa   :  { %v1794_v2 = vadd.f32 %v1793_v16, %v1671_v32  ;;  %v1918_v45 = vadd.f32 %v1917_v24, %v1778_v38 }
 0x2fd   :  { %v3868_v48 = vpop.f32.mrf.mxu0  ;;  %v3893_v11 = vpop.f32.mrf.mxu1 }
 0x2fe   :  { %v1936_v0 = vadd.f32 %v3868_v48, %v1802_v13  ;;  %v5663_v51 = vadd.f32 %v3893_v11, %v1912_v44 }
 0x2ff   :  { %v1929_v56 = vpop.f32.mrf.mxu0  ;;  %v2017_v33 = vpop.f32.mrf.mxu1 }
 0x300   :  { %v1930_v43 = vadd.f32 %v1929_v56, %v1794_v2  ;;  %v5665_v34 = vadd.f32 %v2017_v33, %v1906_v1 }
 0x303   :  { %v3896_v47 = vpop.f32.mrf.mxu1 }
 0x304   :  { %v5667_v20 = vadd.f32 %v3896_v47, %v1924_v19 }
 0x305   :  { %v2029_v27 = vpop.f32.mrf.mxu1 }
 0x306   :  { %v5669_v9 = vadd.f32 %v2029_v27, %v1918_v45 }
 0x308   :  { %v3899_v57 = vpop.f32.mrf.mxu1 }
 0x309   :  { %v5671_v10 = vadd.f32 %v3899_v57, %v1936_v0 }
 0x30a   :  { %v2041_v58 = vpop.f32.mrf.mxu1 }
 0x30b   :  { %v5673_v52 = vadd.f32 %v2041_v58, %v1930_v43 }
 0x30f   :  { %v3924_v37 = vpop.f32.mrf.mxu0 }
 0x311   :  { %v2158_v35 = vpop.f32.mrf.mxu0 }
 0x318   :  { %v3955_v62 = vpop.f32.mrf.mxu1 }
 0x319   :  { %v2341_v8 = vadd.f32 %v3955_v62, %v3924_v37 }
 0x31a   :  { %v2334_v49 = vpop.f32.mrf.mxu1 }
 0x31b   :  { %v2335_v39 = vadd.f32 %v2334_v49, %v2158_v35 }
 0x31f   :  { %v3927_v6 = vpop.f32.mrf.mxu0 }
 0x321   :  { %v2178_v41 = vpop.f32.mrf.mxu0 }
 0x324   :  { %v3930_v17 = vpop.f32.mrf.mxu0 }
 0x326   :  { %v2198_v29 = vpop.f32.mrf.mxu0 }
 0x32a   :  { %v3958_v30 = vpop.f32.mrf.mxu1  ;;  %v3986_v40 = vpop.f32.mrf.mxu0 }
 0x32b   :  { %v2466_v60 = vadd.f32 %v3986_v40, %v2341_v8  ;;  %v2353_v12 = vadd.f32 %v3958_v30, %v3927_v6 }
 0x32c   :  { %v2346_v5 = vpop.f32.mrf.mxu1  ;;  %v2458_v15 = vpop.f32.mrf.mxu0 }
 0x32d   :  { %v2459_v21 = vadd.f32 %v2458_v15, %v2335_v39  ;;  %v2347_v55 = vadd.f32 %v2346_v5, %v2178_v41 }
 0x32f   :  { %v3961_v18 = vpop.f32.mrf.mxu1 }
 0x330   :  { %v2365_v38 = vadd.f32 %v3961_v18, %v3930_v17 }
 0x331   :  { %v2358_v25 = vpop.f32.mrf.mxu1 }
 0x332   :  { %v2359_v16 = vadd.f32 %v2358_v25, %v2198_v29 }
 0x334   :  { %v4017_v53 = vpop.f32.mrf.mxu1 }
 0x335   :  { %v2586_v32 = vadd.f32 %v4017_v53, %v2466_v60 }
 0x336   :  { %v2577_v61 = vpop.f32.mrf.mxu1 }
 0x337   :  { %v2578_v44 = vadd.f32 %v2577_v61, %v2459_v21 }
 0x33a   :  { %v3989_v22 = vpop.f32.mrf.mxu0 }
 0x33b   :  { %v2480_v26 = vadd.f32 %v3989_v22, %v2353_v12 }
 0x33c   :  { %v2472_v50 = vpop.f32.mrf.mxu0 }
 0x33d   :  { %v2473_v4 = vadd.f32 %v2472_v50, %v2347_v55 }
 0x33f   :  { %v3992_v54 = vpop.f32.mrf.mxu0 }
 0x340   :  { %v2494_v45 = vadd.f32 %v3992_v54, %v2365_v38 }
 0x341   :  { %v2486_v14 = vpop.f32.mrf.mxu0 }
 0x342   :  { %v2487_v33 = vadd.f32 %v2486_v14, %v2359_v16 }
 0x345   :  { %v4020_v3 = vpop.f32.mrf.mxu1  ;;  %v4048_v31 = vpop.f32.mrf.mxu0 }
 0x346   :  { %v2728_v63 = vadd.f32 %v4048_v31, %v2586_v32  ;;  %v2602_v23 = vadd.f32 %v4020_v3, %v2480_v26 }
 0x347   :  { %v2593_v36 = vpop.f32.mrf.mxu1  ;;  %v2721_v7 = vpop.f32.mrf.mxu0 }
 0x348   :  { %v2722_v13 = vadd.f32 %v2721_v7, %v2578_v44  ;;  %v2594_v48 = vadd.f32 %v2593_v36, %v2473_v4 }
 0x349   :  { %v4051_v59 = vpop.f32.mrf.mxu0 }
 0x34a   :  { %v4023_v28 = vpop.f32.mrf.mxu1  ;;  %v2740_v11 = vadd.f32 %v4051_v59, %v2602_v23 }
 0x34b   :  { %v2733_v42 = vpop.f32.mrf.mxu0  ;;  %v2618_v43 = vadd.f32 %v4023_v28, %v2494_v45 }
 0x34c   :  { %v2609_v46 = vpop.f32.mrf.mxu1  ;;  %v2734_v47 = vadd.f32 %v2733_v42, %v2594_v48 }
 0x34d   :  { %v4054_v24 = vpop.f32.mrf.mxu0  ;;  %v2610_v37 = vadd.f32 %v2609_v46, %v2487_v33 }
 0x34e   :  { %v4079_v1 = vpop.f32.mrf.mxu1  ;;  %v2752_v35 = vadd.f32 %v4054_v24, %v2618_v43 }
 0x34f   :  { %v2840_v19 = vadd.f32 %v4079_v1, %v2728_v63  ;;  %v2745_v57 = vpop.f32.mrf.mxu0 }
 0x350   :  { %v2833_v2 = vpop.f32.mrf.mxu1  ;;  %v2746_v62 = vadd.f32 %v2745_v57, %v2610_v37 }
 0x351   :  { %v2834_v0 = vadd.f32 %v2833_v2, %v2722_v13  ;;  %2875 = vrot.lane.b32.xlu0 %v2840_v19, %s4102_s2 }
 0x352   :  { %v4082_v56 = vpop.f32.mrf.mxu1 }
 0x353   :  { %v2852_v27 = vadd.f32 %v4082_v56, %v2740_v11  ;;  %2873 = vrot.lane.b32.xlu1 %v2834_v0, %s4102_s2 }
 0x354   :  { %v2845_v58 = vpop.f32.mrf.mxu1 }
 0x355   :  { %v2846_v6 = vadd.f32 %v2845_v58, %v2734_v47  ;;  %2879 = vrot.lane.b32.xlu0 %v2852_v27, %s4102_s2 }
 0x356   :  { %v4085_v41 = vpop.f32.mrf.mxu1 }
 0x357   :  { %v2864_v17 = vadd.f32 %v4085_v41, %v2752_v35  ;;  %2877 = vrot.lane.b32.xlu1 %v2846_v6, %s4102_s2 }
 0x358   :  { %v2857_v49 = vpop.f32.mrf.mxu1 }
 0x359   :  { %v2858_v29 = vadd.f32 %v2857_v49, %v2746_v62  ;;  %2883 = vrot.lane.b32.xlu0 %v2864_v17, %s4102_s2 }
 0x35b   :  { %2881 = vrot.lane.b32.xlu1 %v2858_v29, %s4102_s2 }
 0x3c3   :  { %v2876_v30 = vpop.permute.xlu0 %2875 }
 0x3c4   :  { %v2893_v40 = vsel %vm2891_vm5, %v5663_v51, %v2876_v30 }
 0x3c5   :  { %2899 = vst [vmem:[%s5708_s3 + $0x8] sm:$0xff] %v2893_v40  ;;  %v2874_v5 = vpop.permute.xlu1 %2873 }
 0x3c6   :  { %v2892_v15 = vsel %vm2891_vm5, %v5665_v34, %v2874_v5 }
 0x3c7   :  { %2898 = vst [vmem:[%s5708_s3] sm:$0xff] %v2892_v15  ;;  %v2880_v18 = vpop.permute.xlu0 %2879 }
 0x3c8   :  { %v2895_v22 = vsel %vm2891_vm5, %v5667_v20, %v2880_v18 }
 0x3c9   :  { %2901 = vst [vmem:[%s5708_s3 + $0x18] sm:$0xff] %v2895_v22  ;;  %v2878_v51 = vpop.permute.xlu1 %2877 }
 0x3ca   :  { %v2894_v25 = vsel %vm2891_vm5, %v5669_v9, %v2878_v51 }
 0x3cb   :  { %2900 = vst [vmem:[%s5708_s3 + $0x10] sm:$0xff] %v2894_v25  ;;  %v2884_v34 = vpop.permute.xlu0 %2883 }
 0x3cc   :  { %v2897_v50 = vsel %vm2891_vm5, %v5671_v10, %v2884_v34 }
 0x3cd   :  { %2903 = vst [vmem:[%s5708_s3 + $0x28] sm:$0xff] %v2897_v50  ;;  %v2882_v20 = vpop.permute.xlu1 %2881 }
 0x3ce   :  { %v2896_v53 = vsel %vm2891_vm5, %v5673_v52, %v2882_v20 }
 0x3cf   :  { %2902 = vst [vmem:[%s5708_s3 + $0x20] sm:$0xff] %v2896_v53 }

</bundles_post_ra>
